<compile_context>
chip_gen: v7x
topology: tpu7x:2x2x1
jax: 0.10.0
libtpu: 0.0.40
codegen_flags: <defaults>
</compile_context>

<pallas_src>
import jax
import jax.numpy as jnp
from jax.experimental import pallas as pl
from jax.experimental.pallas import tpu as pltpu

STRIDE = 4                      # synthetic backbone output stride
_MIB = 1024 * 1024


def _round_up(x, m):
    return (x + m - 1) // m * m


def _vmem_limit(block_bytes):
    # ~2x for double buffering + headroom; capped below v7x's 64 MiB VMEM.
    return int(min(56 * _MIB, max(8 * _MIB, 3 * block_bytes)))


# ----------------------------------------------------------------------------
# Kernel 1: fused stem-conv + classifier + representation head + uncertainty
# ----------------------------------------------------------------------------
def _fused_seg_kernel(patches_ref, wstem_ref, bstem_ref, wcls_ref,
                      w1_ref, b1_ref, w2a_ref, b2a_ref, w2b_ref, b2b_ref,
                      outA_ref, outB_ref):
    # stem 4x4 / stride-4 conv as a matmul (K padded to 128): relu(x@W + b)
    feat = jnp.dot(patches_ref[...], wstem_ref[...],
                   preferred_element_type=jnp.float32)
    feat = jnp.maximum(feat + bstem_ref[...], 0.0)          # (TM, cfp) f32
    feat_bf = feat.astype(jnp.bfloat16)

    # packed hidden layer: [rep hidden | uncertainty hidden]
    h1 = jnp.dot(feat_bf, w1_ref[...], preferred_element_type=jnp.float32)
    h1 = jnp.maximum(h1 + b1_ref[...], 0.0)                  # (TM, 2*cfp)
    h1_bf = h1.astype(jnp.bfloat16)

    # group A (linear, lane-dense): [pred | rep | pad]
    outA_ref[...] = (
        jnp.dot(feat_bf, wcls_ref[...], preferred_element_type=jnp.float32)
        + jnp.dot(h1_bf, w2a_ref[...], preferred_element_type=jnp.float32)
        + b2a_ref[...])

    # group B: uncertainty in its own 128-lane group -> softplus on these lanes only
    u = (jnp.dot(h1_bf, w2b_ref[...], preferred_element_type=jnp.float32)
         + b2b_ref[...])
    outB_ref[...] = jnp.maximum(u, 0.0) + jnp.log(1.0 + jnp.exp(-jnp.abs(u)))


def prepare_fused(seg_params, uncer_params):
    """Pack seg + uncertainty-head weights into lane-dense, 128-padded mats."""
    w_stem = seg_params["w_stem"]
    k, cf = w_stem.shape
    nc = seg_params["w_cls"].shape[1]
    od = seg_params["w_rep2"].shape[1]

    kp = _round_up(k, 128)
    cfp = _round_up(cf, 128)
    n1 = 2 * cfp
    na = _round_up(nc + od, 128)      # [pred | rep] lane group
    nb = _round_up(od, 128)           # [uncer] lane group (softplus lanes)

    wstem = jnp.zeros((kp, cfp), jnp.float32).at[:k, :cf].set(w_stem)
    bstem = jnp.zeros((1, cfp), jnp.float32).at[0, :cf].set(seg_params["b_stem"])

    wcls = jnp.zeros((cfp, na), jnp.float32).at[:cf, :nc].set(seg_params["w_cls"])

    w1 = (jnp.zeros((cfp, n1), jnp.float32)
          .at[:cf, :cf].set(seg_params["w_rep1"])
          .at[:cf, cfp:cfp + cf].set(uncer_params["wu1"]))
    b1 = (jnp.zeros((1, n1), jnp.float32)
          .at[0, :cf].set(seg_params["b_rep1"])
          .at[0, cfp:cfp + cf].set(uncer_params["bu1"]))

    w2a = jnp.zeros((n1, na), jnp.float32).at[:cf, nc:nc + od].set(seg_params["w_rep2"])
    b2a = (jnp.zeros((1, na), jnp.float32)
           .at[0, :nc].set(seg_params["b_cls"])
           .at[0, nc:nc + od].set(seg_params["b_rep2"]))

    w2b = jnp.zeros((n1, nb), jnp.float32).at[cfp:cfp + cf, :od].set(uncer_params["wu2"])
    b2b = jnp.zeros((1, nb), jnp.float32).at[0, :od].set(uncer_params["bu2"])

    return {
        "wstem": wstem.astype(jnp.bfloat16), "bstem": bstem,
        "wcls": wcls.astype(jnp.bfloat16),
        "w1": w1.astype(jnp.bfloat16), "b1": b1,
        "w2a": w2a.astype(jnp.bfloat16), "b2a": b2a,
        "w2b": w2b.astype(jnp.bfloat16), "b2b": b2b,
        "k": k, "kp": kp, "cfp": cfp, "n1": n1,
        "na": na, "nb": nb, "nc": nc, "od": od,
    }


def run_seg_fused(fused, x_nchw):
    """Returns (pred, rep, uncer) at stride-4 resolution, all NCHW."""
    B, cin, H, W = x_nchw.shape
    h, w = H // STRIDE, W // STRIDE
    M = B * h * w
    k, kp = fused["k"], fused["kp"]
    cfp, n1, na, nb = fused["cfp"], fused["n1"], fused["na"], fused["nb"]
    nc, od = fused["nc"], fused["od"]
    assert k == STRIDE * STRIDE * cin

    # TODO(synk): fold the 4x4 patch unfold + NCHW->NHWC shuffle into the
    # kernel's BlockSpec load to remove this extra HBM pass at production sizes.
    patches = (jnp.transpose(x_nchw, (0, 2, 3, 1))
               .reshape(B, h, STRIDE, w, STRIDE, cin)
               .transpose(0, 1, 3, 2, 4, 5)
               .reshape(M, k))
    if kp > k:
        patches = jnp.pad(patches, ((0, 0), (0, kp - k)))

    # row tiling: >= 2 grid steps (both v7x TCs busy), bounded remainder padding
    n_tiles = max(2, pl.cdiv(M, 512)) if M >= 16 else 1
    tm = _round_up(pl.cdiv(M, n_tiles), 8)
    mp = _round_up(M, tm)
    if mp > M:
        patches = jnp.pad(patches, ((0, mp - M), (0, 0)))
    patches = patches.astype(jnp.bfloat16)

    blk_bytes = (tm * kp * 2 + kp * cfp * 2 + cfp * 4 + cfp * na * 2
                 + cfp * n1 * 2 + n1 * 4 + n1 * na * 2 + na * 4
                 + n1 * nb * 2 + nb * 4 + tm * na * 4 + tm * nb * 4)

    outA, outB = pl.pallas_call(
        _fused_seg_kernel,
        out_shape=(jax.ShapeDtypeStruct((mp, na), jnp.float32),
                   jax.ShapeDtypeStruct((mp, nb), jnp.float32)),
        grid=(mp // tm,),
        in_specs=[
            pl.BlockSpec((tm, kp), lambda i: (i, 0)),
            pl.BlockSpec((kp, cfp), lambda i: (0, 0)),
            pl.BlockSpec((1, cfp), lambda i: (0, 0)),
            pl.BlockSpec((cfp, na), lambda i: (0, 0)),
            pl.BlockSpec((cfp, n1), lambda i: (0, 0)),
            pl.BlockSpec((1, n1), lambda i: (0, 0)),
            pl.BlockSpec((n1, na), lambda i: (0, 0)),
            pl.BlockSpec((1, na), lambda i: (0, 0)),
            pl.BlockSpec((n1, nb), lambda i: (0, 0)),
            pl.BlockSpec((1, nb), lambda i: (0, 0)),
        ],
        out_specs=(pl.BlockSpec((tm, na), lambda i: (i, 0)),
                   pl.BlockSpec((tm, nb), lambda i: (i, 0))),
        compiler_params=pltpu.CompilerParams(
            dimension_semantics=("parallel",),
            vmem_limit_bytes=_vmem_limit(blk_bytes)),
    )(patches, fused["wstem"], fused["bstem"], fused["wcls"],
      fused["w1"], fused["b1"], fused["w2a"], fused["b2a"],
      fused["w2b"], fused["b2b"])

    outA, outB = outA[:M], outB[:M]

    def to_nchw(t, c):
        return t.reshape(B, h, w, c).transpose(0, 3, 1, 2)

    pred = to_nchw(outA[:, :nc], nc)
    rep = to_nchw(outA[:, nc:nc + od], od)
    uncer = to_nchw(outB[:, :od], od)
    return pred, rep, uncer


# ----------------------------------------------------------------------------
# Bilinear interpolation matrices (align_corners=True)
# ----------------------------------------------------------------------------
def _bilinear_matrix(n_out, n_in):
    if n_in == 1:
        return jnp.ones((n_out, 1), jnp.float32)
    i = jnp.arange(n_out, dtype=jnp.float32)
    s = i * (n_in - 1) / max(n_out - 1, 1)
    f = jnp.clip(jnp.floor(s).astype(jnp.int32), 0, n_in - 2)
    t = s - f.astype(jnp.float32)
    U = jnp.zeros((n_out, n_in), jnp.float32)
    rows = jnp.arange(n_out)
    U = U.at[rows, f].set(1.0 - t)
    U = U.at[rows, f + 1].add(t)
    return U


# ----------------------------------------------------------------------------
# Kernel 2: bilinear upsample, a slab of channels per grid step
# ----------------------------------------------------------------------------
def _upsample_kernel(x_ref, uh_ref, uwT_ref, o_ref):
    uh = uh_ref[...]
    uwT = uwT_ref[...]
    for c in range(x_ref.shape[0]):           # static slab of channels
        t = jnp.dot(uh, x_ref[c], preferred_element_type=jnp.float32)
        o_ref[c] = jnp.dot(t.astype(jnp.bfloat16), uwT,
                           preferred_element_type=jnp.float32)


def bilinear_upsample(x_nchw, H_out, W_out):
    """F.interpolate(x, size=(H_out, W_out), mode='bilinear', align_corners=True)."""
    B, C, h, w = x_nchw.shape
    BC = B * C
    uh = _bilinear_matrix(H_out, h).astype(jnp.bfloat16)
    uwT = _bilinear_matrix(W_out, w).T.astype(jnp.bfloat16)

    tc = max(1, min(8, BC // 2)) if BC >= 2 else 1   # >= 2 grid steps when possible
    bcp = _round_up(BC, tc)
    x = x_nchw.reshape(BC, h, w).astype(jnp.bfloat16)
    if bcp > BC:
        x = jnp.pad(x, ((0, bcp - BC), (0, 0), (0, 0)))

    blk_bytes = (tc * h * w * 2 + H_out * h * 2 + w * W_out * 2
                 + tc * H_out * W_out * 4)
    out = pl.pallas_call(
        _upsample_kernel,
        out_shape=jax.ShapeDtypeStruct((bcp, H_out, W_out), jnp.float32),
        grid=(bcp // tc,),
        in_specs=[
            pl.BlockSpec((tc, h, w), lambda i: (i, 0, 0)),
            pl.BlockSpec((H_out, h), lambda i: (0, 0)),
            pl.BlockSpec((w, W_out), lambda i: (0, 0)),
        ],
        out_specs=pl.BlockSpec((tc, H_out, W_out), lambda i: (i, 0, 0)),
        compiler_params=pltpu.CompilerParams(
            dimension_semantics=("parallel",),
            vmem_limit_bytes=_vmem_limit(blk_bytes)),
    )(x, uh, uwT)
    return out[:BC].reshape(B, C, H_out, W_out)


# ----------------------------------------------------------------------------
# Kernel 3: EMA path — upsample + softmax + channel max/argmax (streaming)
# ----------------------------------------------------------------------------
def _ema_kernel(x_ref, uh_ref, uwT_ref, up_ref, logit_ref, label_ref):
    C = x_ref.shape[1]
    th, wout = logit_ref.shape[1], logit_ref.shape[2]
    uh = uh_ref[...]
    uwT = uwT_ref[...]

    # pass 1: upsample each channel into up_ref, carry only the running max
    def body1(c, m):
        t = jnp.dot(uh, x_ref[0, c], preferred_element_type=jnp.float32)
        yc = jnp.dot(t.astype(jnp.bfloat16), uwT,
                     preferred_element_type=jnp.float32)
        up_ref[0, c] = yc
        return jnp.maximum(m, yc)

    m = jax.lax.fori_loop(0, C, body1,
                          jnp.full((th, wout), -jnp.inf, jnp.float32))

    # pass 2: streaming softmax denominator + channel max / argmax
    def body2(c, carry):
        s, pmax, arg = carry
        e = jnp.exp(up_ref[0, c] - m)
        gt = e > pmax              # strict '>' keeps the first maximal index
        return s + e, jnp.where(gt, e, pmax), jnp.where(gt, c, arg)

    s, pmax, arg = jax.lax.fori_loop(
        0, C, body2,
        (jnp.zeros((th, wout), jnp.float32),
         jnp.full((th, wout), -jnp.inf, jnp.float32),
         jnp.zeros((th, wout), jnp.int32)))

    logit_ref[0] = pmax / s
    label_ref[0] = arg


def ema_upsample_softmax_max(pred_nchw, H_out, W_out):
    """Returns (upsampled logits NCHW, max softmax prob, argmax label)."""
    B, C, h, w = pred_nchw.shape
    th = H_out if H_out <= 128 else 128          # spatial row tile
    Hp = _round_up(H_out, th)

    uh = _bilinear_matrix(H_out, h)
    if Hp > H_out:
        uh = jnp.pad(uh, ((0, Hp - H_out), (0, 0)))
    uh = uh.astype(jnp.bfloat16)
    uwT = _bilinear_matrix(W_out, w).T.astype(jnp.bfloat16)
    x = pred_nchw.astype(jnp.bfloat16)

    blk_bytes = (C * h * w * 2 + th * h * 2 + w * W_out * 2
                 + C * th * W_out * 4 + 2 * th * W_out * 4)

    up, logits, labels = pl.pallas_call(
        _ema_kernel,
        out_shape=(
            jax.ShapeDtypeStruct((B, C, Hp, W_out), jnp.float32),
            jax.ShapeDtypeStruct((B, Hp, W_out), jnp.float32),
            jax.ShapeDtypeStruct((B, Hp, W_out), jnp.int32),
        ),
        grid=(B, Hp // th),
        in_specs=[
            pl.BlockSpec((1, C, h, w), lambda b, t: (b, 0, 0, 0)),
            pl.BlockSpec((th, h), lambda b, t: (t, 0)),
            pl.BlockSpec((w, W_out), lambda b, t: (0, 0)),
        ],
        out_specs=(
            pl.BlockSpec((1, C, th, W_out), lambda b, t: (b, 0, t, 0)),
            pl.BlockSpec((1, th, W_out), lambda b, t: (b, t, 0)),
            pl.BlockSpec((1, th, W_out), lambda b, t: (b, t, 0)),
        ),
        compiler_params=pltpu.CompilerParams(
            dimension_semantics=("parallel", "parallel"),
            vmem_limit_bytes=_vmem_limit(blk_bytes)),
    )(x, uh, uwT)
    return up[:, :, :H_out], logits[:, :H_out], labels[:, :H_out]


# ----------------------------------------------------------------------------
# Model_with_un.forward
# ----------------------------------------------------------------------------
def model_with_un_forward(params, ema_params, uncer_params,
                          train_l_image, train_u_image):
    Bl = train_l_image.shape[0]
    Hl, Wl = train_l_image.shape[2:]
    Hu, Wu = train_u_image.shape[2:]

    fused_student = prepare_fused(params, uncer_params)
    fused_ema = prepare_fused(ema_params, uncer_params)

    # ---- EMA (teacher) branch: only pred is consumed (rep/uncer discarded) ----
    pred_u_ema, _, _ = run_seg_fused(fused_ema, train_u_image)
    pred_u_large_raw, pseudo_logits, pseudo_labels = ema_upsample_softmax_max(
        pred_u_ema, Hu, Wu)

    # TODO(synk): batch_transform / generate_cut_gather (random crop/scale,
    # cutmix gather across devices) are config-driven data augmentations with
    # no clean Pallas equivalent; identity passthrough here.
    train_u_aug_image = train_u_image
    train_u_aug_label = pseudo_labels
    train_u_aug_logits = pseudo_logits

    # ---- student branch: labeled + unlabeled run as one fused batch ----
    if train_l_image.shape[1:] == train_u_aug_image.shape[1:]:
        x_all = jnp.concatenate((train_l_image, train_u_aug_image), axis=0)
        pred_all, rep_all, uncer_all = run_seg_fused(fused_student, x_all)
    else:
        p_l, r_l, u_l = run_seg_fused(fused_student, train_l_image)
        p_u, r_u, u_u = run_seg_fused(fused_student, train_u_aug_image)
        pred_all = jnp.concatenate((p_l, p_u), axis=0)
        rep_all = jnp.concatenate((r_l, r_u), axis=0)
        uncer_all = jnp.concatenate((u_l, u_u), axis=0)

    # both large student predictions use the labeled image size (matches ref)
    pred_large = bilinear_upsample(pred_all, Hl, Wl)
    pred_l_large = pred_large[:Bl]
    pred_u_large = pred_large[Bl:]

    return (pred_l_large, pred_u_large, train_u_aug_label, train_u_aug_logits,
            rep_all, pred_all, pred_u_large_raw, uncer_all)


# ----------------------------------------------------------------------------
# Deterministic parameter init + pure-JAX reference for correctness checking
# ----------------------------------------------------------------------------
def init_params(key, cin, cf, num_classes, output_dim):
    ks = jax.random.split(key, 12)
    n = lambda k, s, scale=0.1: (scale * jax.random.normal(k, s)).astype(jnp.float32)
    params = {
        "w_stem": n(ks[0], (STRIDE * STRIDE * cin, cf)),
        "b_stem": n(ks[1], (cf,)),
        "w_cls": n(ks[2], (cf, num_classes)),
        "b_cls": n(ks[3], (num_classes,)),
        "w_rep1": n(ks[4], (cf, cf)),
        "b_rep1": n(ks[5], (cf,)),
        "w_rep2": n(ks[6], (cf, output_dim)),
        "b_rep2": n(ks[7], (output_dim,)),
    }
    uncer = {
        "wu1": n(ks[8], (cf, cf)),
        "bu1": n(ks[9], (cf,)),
        "wu2": n(ks[10], (cf, output_dim)),
        "bu2": n(ks[11], (output_dim,)),
    }
    # ema_model = copy.deepcopy(self.model) at init -> identical params
    ema_params = jax.tree_util.tree_map(lambda p: p.copy(), params)
    return params, ema_params, uncer


def _reference_forward(params, ema_params, uncer_params, xl, xu):
    def seg(p, un, x):
        B, cin, H, W = x.shape
        h, w = H // STRIDE, W // STRIDE
        patches = (x.transpose(0, 2, 3, 1)
                   .reshape(B, h, STRIDE, w, STRIDE, cin)
                   .transpose(0, 1, 3, 2, 4, 5).reshape(B * h * w, -1))
        feat = jax.nn.relu(patches @ p["w_stem"] + p["b_stem"])
        pred = feat @ p["w_cls"] + p["b_cls"]
        rep = jax.nn.relu(feat @ p["w_rep1"] + p["b_rep1"]) @ p["w_rep2"] + p["b_rep2"]
        unc = jax.nn.softplus(
            jax.nn.relu(feat @ un["wu1"] + un["bu1"]) @ un["wu2"] + un["bu2"])
        to = lambda t: t.reshape(B, h, w, -1).transpose(0, 3, 1, 2)
        return to(pred), to(rep), to(unc)

    def up(x, H, W):
        Uh = _bilinear_matrix(H, x.shape[2])
        Uw = _bilinear_matrix(W, x.shape[3])
        return jnp.einsum("Hh,bchw,Ww->bcHW", Uh, x, Uw)

    Hl, Wl = xl.shape[2:]
    Hu, Wu = xu.shape[2:]
    pe, _, _ = seg(ema_params, uncer_params, xu)
    pred_u_large_raw = up(pe, Hu, Wu)
    sm = jax.nn.softmax(pred_u_large_raw, axis=1)
    pseudo_logits = sm.max(axis=1)
    pseudo_labels = sm.argmax(axis=1).astype(jnp.int32)
    x_all = jnp.concatenate((xl, xu), 0)
    pred_all, rep_all, uncer_all = seg(params, uncer_params, x_all)
    pred_large = up(pred_all, Hl, Wl)
    return (pred_large[:xl.shape[0]], pred_large[xl.shape[0]:],
            pseudo_labels, pseudo_logits, rep_all, pred_all,
            pred_u_large_raw, uncer_all)


if __name__ == "__main__":
    B, Cin, H, W = 2, 3, 16, 16
    NUM_CLASSES, OUTPUT_DIM, CF = 8, 16, 32

    key = jax.random.PRNGKey(0)
    k_l, k_u, k_p = jax.random.split(key, 3)
    train_l_image = jax.random.normal(k_l, (B, Cin, H, W), dtype=jnp.float32)
    train_u_image = jax.random.normal(k_u, (B, Cin, H, W), dtype=jnp.float32)

    params, ema_params, uncer_params = init_params(
        k_p, Cin, CF, NUM_CLASSES, OUTPUT_DIM)

    fwd = jax.jit(model_with_un_forward)
    outs = fwd(params, ema_params, uncer_params, train_l_image, train_u_image)
    outs = jax.block_until_ready(outs)

    expected_shapes = [
        (B, NUM_CLASSES, H, W),                # pred_l_large
        (B, NUM_CLASSES, H, W),                # pred_u_large
        (B, H, W),                             # train_u_aug_label
        (B, H, W),                             # train_u_aug_logits
        (2 * B, OUTPUT_DIM, H // 4, W // 4),   # rep_all
        (2 * B, NUM_CLASSES, H // 4, W // 4),  # pred_all
        (B, NUM_CLASSES, H, W),                # pred_u_large_raw
        (2 * B, OUTPUT_DIM, H // 4, W // 4),   # uncer_all
    ]
    for o, s in zip(outs, expected_shapes):
        assert tuple(o.shape) == s, (o.shape, s)
        assert bool(jnp.all(jnp.isfinite(o.astype(jnp.float32))))

    # correctness vs. a pure-JAX f32 reference (bf16 matmul operands -> loose tol;
    # labels (index 2) skipped because near-ties can legitimately flip argmax)
    refs = _reference_forward(params, ema_params, uncer_params,
                              train_l_image, train_u_image)
    for idx, (o, r) in enumerate(zip(outs, refs)):
        if idx == 2:
            assert bool(jnp.all((o >= 0) & (o < NUM_CLASSES)))
            continue
        assert bool(jnp.allclose(o.astype(jnp.float32), r.astype(jnp.float32),
                                 atol=6e-2, rtol=6e-2)), idx

    print("KERNEL_OK")
</pallas_src>

<mosaic_0001>
module attributes {stable_mosaic.version = 11 : i64} {
  func.func private @main(%arg0: i32) attributes {dimension_semantics = [#tpu.dimension_semantics<core_parallel>], iteration_bounds = array<i64: 2>, tpu.core_type = #tpu.core_type<sc_scalar_subcore>, window_params = []} {
    return
  }
}

module attributes {stable_mosaic.version = 11 : i64} {
  func.func private @main(%arg0: i32) attributes {dimension_semantics = [#tpu.dimension_semantics<core_parallel>], iteration_bounds = array<i64: 2>, tpu.core_type = #tpu.core_type<sc_scalar_subcore>, window_params = []} {
    return
  }
}

module attributes {stable_mosaic.version = 11 : i64} {
  func.func @_fused_seg_kernel(%arg0: i32, %arg1: memref<32x128xbf16, #tpu.memory_space<vmem>>, %arg2: memref<128x128xbf16, #tpu.memory_space<vmem>>, %arg3: memref<1x128xf32, #tpu.memory_space<vmem>>, %arg4: memref<128x128xbf16, #tpu.memory_space<vmem>>, %arg5: memref<128x256xbf16, #tpu.memory_space<vmem>>, %arg6: memref<1x256xf32, #tpu.memory_space<vmem>>, %arg7: memref<256x128xbf16, #tpu.memory_space<vmem>>, %arg8: memref<1x128xf32, #tpu.memory_space<vmem>>, %arg9: memref<256x128xbf16, #tpu.memory_space<vmem>>, %arg10: memref<1x128xf32, #tpu.memory_space<vmem>>, %arg11: memref<32x128xf32, #tpu.memory_space<vmem>>, %arg12: memref<32x128xf32, #tpu.memory_space<vmem>>) attributes {dimension_semantics = [#tpu.dimension_semantics<parallel>], iteration_bounds = array<i64: 2>, scalar_prefetch = 0 : i64, scratch_operands = 0 : i64, tpu.core_type = #tpu.core_type<tc>, window_params = [{transform_indices = @transform_0, window_bounds = array<i64: 32, 128>}, {pipeline_mode = #tpu.pipeline_mode<synchronous>, transform_indices = @transform_1, window_bounds = array<i64: 128, 128>}, {pipeline_mode = #tpu.pipeline_mode<synchronous>, transform_indices = @transform_2, window_bounds = array<i64: 1, 128>}, {pipeline_mode = #tpu.pipeline_mode<synchronous>, transform_indices = @transform_3, window_bounds = array<i64: 128, 128>}, {pipeline_mode = #tpu.pipeline_mode<synchronous>, transform_indices = @transform_4, window_bounds = array<i64: 128, 256>}, {pipeline_mode = #tpu.pipeline_mode<synchronous>, transform_indices = @transform_5, window_bounds = array<i64: 1, 256>}, {pipeline_mode = #tpu.pipeline_mode<synchronous>, transform_indices = @transform_6, window_bounds = array<i64: 256, 128>}, {pipeline_mode = #tpu.pipeline_mode<synchronous>, transform_indices = @transform_7, window_bounds = array<i64: 1, 128>}, {pipeline_mode = #tpu.pipeline_mode<synchronous>, transform_indices = @transform_8, window_bounds = array<i64: 256, 128>}, {pipeline_mode = #tpu.pipeline_mode<synchronous>, transform_indices = @transform_9, window_bounds = array<i64: 1, 128>}, {transform_indices = @transform_10, window_bounds = array<i64: 32, 128>}, {transform_indices = @transform_11, window_bounds = array<i64: 32, 128>}]} {
    %c0 = arith.constant 0 : index
    %c0_0 = arith.constant 0 : index
    %0 = vector.load %arg1[%c0, %c0_0] : memref<32x128xbf16, #tpu.memory_space<vmem>>, vector<32x128xbf16>
    %c0_1 = arith.constant 0 : index
    %c0_2 = arith.constant 0 : index
    %1 = vector.load %arg2[%c0_1, %c0_2] : memref<128x128xbf16, #tpu.memory_space<vmem>>, vector<128x128xbf16>
    %cst = arith.constant dense<0.000000e+00> : vector<32x128xf32>
    %2 = tpu.matmul %0, %1, %cst {dimension_numbers = #tpu.dot_dimension_numbers<[1], [0], [0], [1], [0, 0, 1, 1], [], []>} : vector<32x128xbf16>, vector<128x128xbf16>, vector<32x128xf32> -> vector<32x128xf32>
    %c0_3 = arith.constant 0 : index
    %c0_4 = arith.constant 0 : index
    %3 = vector.load %arg3[%c0_3, %c0_4] : memref<1x128xf32, #tpu.memory_space<vmem>>, vector<1x128xf32>
    %4 = vector.broadcast %3 : vector<1x128xf32> to vector<32x128xf32>
    %5 = arith.addf %2, %4 : vector<32x128xf32>
    %cst_5 = arith.constant 0.000000e+00 : f32
    %6 = vector.broadcast %cst_5 : f32 to vector<32x128xf32>
    %7 = arith.maximumf %5, %6 : vector<32x128xf32>
    %8 = arith.truncf %7 : vector<32x128xf32> to vector<32x128xbf16>
    %c0_6 = arith.constant 0 : index
    %c0_7 = arith.constant 0 : index
    %9 = vector.load %arg5[%c0_6, %c0_7] : memref<128x256xbf16, #tpu.memory_space<vmem>>, vector<128x256xbf16>
    %cst_8 = arith.constant dense<0.000000e+00> : vector<32x256xf32>
    %10 = tpu.matmul %8, %9, %cst_8 {dimension_numbers = #tpu.dot_dimension_numbers<[1], [0], [0], [1], [0, 0, 1, 1], [], []>} : vector<32x128xbf16>, vector<128x256xbf16>, vector<32x256xf32> -> vector<32x256xf32>
    %c0_9 = arith.constant 0 : index
    %c0_10 = arith.constant 0 : index
    %11 = vector.load %arg6[%c0_9, %c0_10] : memref<1x256xf32, #tpu.memory_space<vmem>>, vector<1x256xf32>
    %12 = vector.broadcast %11 : vector<1x256xf32> to vector<32x256xf32>
    %13 = arith.addf %10, %12 : vector<32x256xf32>
    %cst_11 = arith.constant 0.000000e+00 : f32
    %14 = vector.broadcast %cst_11 : f32 to vector<32x256xf32>
    %15 = arith.maximumf %13, %14 : vector<32x256xf32>
    %16 = arith.truncf %15 : vector<32x256xf32> to vector<32x256xbf16>
    %c0_12 = arith.constant 0 : index
    %c0_13 = arith.constant 0 : index
    %17 = vector.load %arg4[%c0_12, %c0_13] : memref<128x128xbf16, #tpu.memory_space<vmem>>, vector<128x128xbf16>
    %cst_14 = arith.constant dense<0.000000e+00> : vector<32x128xf32>
    %18 = tpu.matmul %8, %17, %cst_14 {dimension_numbers = #tpu.dot_dimension_numbers<[1], [0], [0], [1], [0, 0, 1, 1], [], []>} : vector<32x128xbf16>, vector<128x128xbf16>, vector<32x128xf32> -> vector<32x128xf32>
    %c0_15 = arith.constant 0 : index
    %c0_16 = arith.constant 0 : index
    %19 = vector.load %arg7[%c0_15, %c0_16] : memref<256x128xbf16, #tpu.memory_space<vmem>>, vector<256x128xbf16>
    %cst_17 = arith.constant dense<0.000000e+00> : vector<32x128xf32>
    %20 = tpu.matmul %16, %19, %cst_17 {dimension_numbers = #tpu.dot_dimension_numbers<[1], [0], [0], [1], [0, 0, 1, 1], [], []>} : vector<32x256xbf16>, vector<256x128xbf16>, vector<32x128xf32> -> vector<32x128xf32>
    %21 = arith.addf %18, %20 : vector<32x128xf32>
    %c0_18 = arith.constant 0 : index
    %c0_19 = arith.constant 0 : index
    %22 = vector.load %arg8[%c0_18, %c0_19] : memref<1x128xf32, #tpu.memory_space<vmem>>, vector<1x128xf32>
    %23 = vector.broadcast %22 : vector<1x128xf32> to vector<32x128xf32>
    %24 = arith.addf %21, %23 : vector<32x128xf32>
    %c0_20 = arith.constant 0 : index
    %c0_21 = arith.constant 0 : index
    %25 = vector.load %arg11[%c0_20, %c0_21] : memref<32x128xf32, #tpu.memory_space<vmem>>, vector<32x128xf32>
    tpu.vector_store %arg11[%c0_20, %c0_21], %24 {strides = array<i32>} : memref<32x128xf32, #tpu.memory_space<vmem>>, vector<32x128xf32>,
    %c0_22 = arith.constant 0 : index
    %c0_23 = arith.constant 0 : index
    %26 = vector.load %arg9[%c0_22, %c0_23] : memref<256x128xbf16, #tpu.memory_space<vmem>>, vector<256x128xbf16>
    %cst_24 = arith.constant dense<0.000000e+00> : vector<32x128xf32>
    %27 = tpu.matmul %16, %26, %cst_24 {dimension_numbers = #tpu.dot_dimension_numbers<[1], [0], [0], [1], [0, 0, 1, 1], [], []>} : vector<32x256xbf16>, vector<256x128xbf16>, vector<32x128xf32> -> vector<32x128xf32>
    %c0_25 = arith.constant 0 : index
    %c0_26 = arith.constant 0 : index
    %28 = vector.load %arg10[%c0_25, %c0_26] : memref<1x128xf32, #tpu.memory_space<vmem>>, vector<1x128xf32>
    %29 = vector.broadcast %28 : vector<1x128xf32> to vector<32x128xf32>
    %30 = arith.addf %27, %29 : vector<32x128xf32>
    %cst_27 = arith.constant 0.000000e+00 : f32
    %31 = vector.broadcast %cst_27 : f32 to vector<32x128xf32>
    %32 = arith.maximumf %30, %31 : vector<32x128xf32>
    %33 = math.absf %30 : vector<32x128xf32>
    %cst_28 = arith.constant 0.000000e+00 : f32
    %34 = vector.broadcast %cst_28 : f32 to vector<32x128xf32>
    %35 = arith.subf %34, %33 : vector<32x128xf32>
    %36 = math.exp %35 : vector<32x128xf32>
    %cst_29 = arith.constant 1.000000e+00 : f32
    %37 = vector.broadcast %cst_29 : f32 to vector<32x128xf32>
    %38 = arith.addf %37, %36 : vector<32x128xf32>
    %39 = math.log %38 : vector<32x128xf32>
    %40 = arith.addf %32, %39 : vector<32x128xf32>
    %c0_30 = arith.constant 0 : index
    %c0_31 = arith.constant 0 : index
    %41 = vector.load %arg12[%c0_30, %c0_31] : memref<32x128xf32, #tpu.memory_space<vmem>>, vector<32x128xf32>
    tpu.vector_store %arg12[%c0_30, %c0_31], %40 {strides = array<i32>} : memref<32x128xf32, #tpu.memory_space<vmem>>, vector<32x128xf32>,
    return
  }
  func.func @transform_0(%arg0: i32) -> (i32, i32) {
    %c0_i32 = arith.constant 0 : i32
    %c0_i32_0 = arith.constant 0 : i32
    return %arg0, %c0_i32 : i32, i32
  }
  func.func @transform_1(%arg0: i32) -> (i32, i32) {
    %c0_i32 = arith.constant 0 : i32
    %c0_i32_0 = arith.constant 0 : i32
    %c0_i32_1 = arith.constant 0 : i32
    return %c0_i32, %c0_i32_0 : i32, i32
  }
  func.func @transform_2(%arg0: i32) -> (i32, i32) {
    %c0_i32 = arith.constant 0 : i32
    %c0_i32_0 = arith.constant 0 : i32
    %c0_i32_1 = arith.constant 0 : i32
    return %c0_i32, %c0_i32_0 : i32, i32
  }
  func.func @transform_3(%arg0: i32) -> (i32, i32) {
    %c0_i32 = arith.constant 0 : i32
    %c0_i32_0 = arith.constant 0 : i32
    %c0_i32_1 = arith.constant 0 : i32
    return %c0_i32, %c0_i32_0 : i32, i32
  }
  func.func @transform_4(%arg0: i32) -> (i32, i32) {
    %c0_i32 = arith.constant 0 : i32
    %c0_i32_0 = arith.constant 0 : i32
    %c0_i32_1 = arith.constant 0 : i32
    return %c0_i32, %c0_i32_0 : i32, i32
  }
  func.func @transform_5(%arg0: i32) -> (i32, i32) {
    %c0_i32 = arith.constant 0 : i32
    %c0_i32_0 = arith.constant 0 : i32
    %c0_i32_1 = arith.constant 0 : i32
    return %c0_i32, %c0_i32_0 : i32, i32
  }
  func.func @transform_6(%arg0: i32) -> (i32, i32) {
    %c0_i32 = arith.constant 0 : i32
    %c0_i32_0 = arith.constant 0 : i32
    %c0_i32_1 = arith.constant 0 : i32
    return %c0_i32, %c0_i32_0 : i32, i32
  }
  func.func @transform_7(%arg0: i32) -> (i32, i32) {
    %c0_i32 = arith.constant 0 : i32
    %c0_i32_0 = arith.constant 0 : i32
    %c0_i32_1 = arith.constant 0 : i32
    return %c0_i32, %c0_i32_0 : i32, i32
  }
  func.func @transform_8(%arg0: i32) -> (i32, i32) {
    %c0_i32 = arith.constant 0 : i32
    %c0_i32_0 = arith.constant 0 : i32
    %c0_i32_1 = arith.constant 0 : i32
    return %c0_i32, %c0_i32_0 : i32, i32
  }
  func.func @transform_9(%arg0: i32) -> (i32, i32) {
    %c0_i32 = arith.constant 0 : i32
    %c0_i32_0 = arith.constant 0 : i32
    %c0_i32_1 = arith.constant 0 : i32
    return %c0_i32, %c0_i32_0 : i32, i32
  }
  func.func @transform_10(%arg0: i32) -> (i32, i32) {
    %c0_i32 = arith.constant 0 : i32
    %c0_i32_0 = arith.constant 0 : i32
    return %arg0, %c0_i32 : i32, i32
  }
  func.func @transform_11(%arg0: i32) -> (i32, i32) {
    %c0_i32 = arith.constant 0 : i32
    %c0_i32_0 = arith.constant 0 : i32
    return %arg0, %c0_i32 : i32, i32
  }
}

module attributes {stable_mosaic.version = 11 : i64} {
  func.func @_fused_seg_kernel(%arg0: i32, %arg1: memref<16x128xbf16, #tpu.memory_space<vmem>>, %arg2: memref<128x128xbf16, #tpu.memory_space<vmem>>, %arg3: memref<1x128xf32, #tpu.memory_space<vmem>>, %arg4: memref<128x128xbf16, #tpu.memory_space<vmem>>, %arg5: memref<128x256xbf16, #tpu.memory_space<vmem>>, %arg6: memref<1x256xf32, #tpu.memory_space<vmem>>, %arg7: memref<256x128xbf16, #tpu.memory_space<vmem>>, %arg8: memref<1x128xf32, #tpu.memory_space<vmem>>, %arg9: memref<256x128xbf16, #tpu.memory_space<vmem>>, %arg10: memref<1x128xf32, #tpu.memory_space<vmem>>, %arg11: memref<16x128xf32, #tpu.memory_space<vmem>>, %arg12: memref<16x128xf32, #tpu.memory_space<vmem>>) attributes {dimension_semantics = [#tpu.dimension_semantics<parallel>], iteration_bounds = array<i64: 2>, scalar_prefetch = 0 : i64, scratch_operands = 0 : i64, tpu.core_type = #tpu.core_type<tc>, window_params = [{transform_indices = @transform_0, window_bounds = array<i64: 16, 128>}, {pipeline_mode = #tpu.pipeline_mode<synchronous>, transform_indices = @transform_1, window_bounds = array<i64: 128, 128>}, {pipeline_mode = #tpu.pipeline_mode<synchronous>, transform_indices = @transform_2, window_bounds = array<i64: 1, 128>}, {pipeline_mode = #tpu.pipeline_mode<synchronous>, transform_indices = @transform_3, window_bounds = array<i64: 128, 128>}, {pipeline_mode = #tpu.pipeline_mode<synchronous>, transform_indices = @transform_4, window_bounds = array<i64: 128, 256>}, {pipeline_mode = #tpu.pipeline_mode<synchronous>, transform_indices = @transform_5, window_bounds = array<i64: 1, 256>}, {pipeline_mode = #tpu.pipeline_mode<synchronous>, transform_indices = @transform_6, window_bounds = array<i64: 256, 128>}, {pipeline_mode = #tpu.pipeline_mode<synchronous>, transform_indices = @transform_7, window_bounds = array<i64: 1, 128>}, {pipeline_mode = #tpu.pipeline_mode<synchronous>, transform_indices = @transform_8, window_bounds = array<i64: 256, 128>}, {pipeline_mode = #tpu.pipeline_mode<synchronous>, transform_indices = @transform_9, window_bounds = array<i64: 1, 128>}, {transform_indices = @transform_10, window_bounds = array<i64: 16, 128>}, {transform_indices = @transform_11, window_bounds = array<i64: 16, 128>}]} {
    %c0 = arith.constant 0 : index
    %c0_0 = arith.constant 0 : index
    %0 = vector.load %arg1[%c0, %c0_0] : memref<16x128xbf16, #tpu.memory_space<vmem>>, vector<16x128xbf16>
    %c0_1 = arith.constant 0 : index
    %c0_2 = arith.constant 0 : index
    %1 = vector.load %arg2[%c0_1, %c0_2] : memref<128x128xbf16, #tpu.memory_space<vmem>>, vector<128x128xbf16>
    %cst = arith.constant dense<0.000000e+00> : vector<16x128xf32>
    %2 = tpu.matmul %0, %1, %cst {dimension_numbers = #tpu.dot_dimension_numbers<[1], [0], [0], [1], [0, 0, 1, 1], [], []>} : vector<16x128xbf16>, vector<128x128xbf16>, vector<16x128xf32> -> vector<16x128xf32>
    %c0_3 = arith.constant 0 : index
    %c0_4 = arith.constant 0 : index
    %3 = vector.load %arg3[%c0_3, %c0_4] : memref<1x128xf32, #tpu.memory_space<vmem>>, vector<1x128xf32>
    %4 = vector.broadcast %3 : vector<1x128xf32> to vector<16x128xf32>
    %5 = arith.addf %2, %4 : vector<16x128xf32>
    %cst_5 = arith.constant 0.000000e+00 : f32
    %6 = vector.broadcast %cst_5 : f32 to vector<16x128xf32>
    %7 = arith.maximumf %5, %6 : vector<16x128xf32>
    %8 = arith.truncf %7 : vector<16x128xf32> to vector<16x128xbf16>
    %c0_6 = arith.constant 0 : index
    %c0_7 = arith.constant 0 : index
    %9 = vector.load %arg5[%c0_6, %c0_7] : memref<128x256xbf16, #tpu.memory_space<vmem>>, vector<128x256xbf16>
    %cst_8 = arith.constant dense<0.000000e+00> : vector<16x256xf32>
    %10 = tpu.matmul %8, %9, %cst_8 {dimension_numbers = #tpu.dot_dimension_numbers<[1], [0], [0], [1], [0, 0, 1, 1], [], []>} : vector<16x128xbf16>, vector<128x256xbf16>, vector<16x256xf32> -> vector<16x256xf32>
    %c0_9 = arith.constant 0 : index
    %c0_10 = arith.constant 0 : index
    %11 = vector.load %arg6[%c0_9, %c0_10] : memref<1x256xf32, #tpu.memory_space<vmem>>, vector<1x256xf32>
    %12 = vector.broadcast %11 : vector<1x256xf32> to vector<16x256xf32>
    %13 = arith.addf %10, %12 : vector<16x256xf32>
    %cst_11 = arith.constant 0.000000e+00 : f32
    %14 = vector.broadcast %cst_11 : f32 to vector<16x256xf32>
    %15 = arith.maximumf %13, %14 : vector<16x256xf32>
    %16 = arith.truncf %15 : vector<16x256xf32> to vector<16x256xbf16>
    %c0_12 = arith.constant 0 : index
    %c0_13 = arith.constant 0 : index
    %17 = vector.load %arg4[%c0_12, %c0_13] : memref<128x128xbf16, #tpu.memory_space<vmem>>, vector<128x128xbf16>
    %cst_14 = arith.constant dense<0.000000e+00> : vector<16x128xf32>
    %18 = tpu.matmul %8, %17, %cst_14 {dimension_numbers = #tpu.dot_dimension_numbers<[1], [0], [0], [1], [0, 0, 1, 1], [], []>} : vector<16x128xbf16>, vector<128x128xbf16>, vector<16x128xf32> -> vector<16x128xf32>
    %c0_15 = arith.constant 0 : index
    %c0_16 = arith.constant 0 : index
    %19 = vector.load %arg7[%c0_15, %c0_16] : memref<256x128xbf16, #tpu.memory_space<vmem>>, vector<256x128xbf16>
    %cst_17 = arith.constant dense<0.000000e+00> : vector<16x128xf32>
    %20 = tpu.matmul %16, %19, %cst_17 {dimension_numbers = #tpu.dot_dimension_numbers<[1], [0], [0], [1], [0, 0, 1, 1], [], []>} : vector<16x256xbf16>, vector<256x128xbf16>, vector<16x128xf32> -> vector<16x128xf32>
    %21 = arith.addf %18, %20 : vector<16x128xf32>
    %c0_18 = arith.constant 0 : index
    %c0_19 = arith.constant 0 : index
    %22 = vector.load %arg8[%c0_18, %c0_19] : memref<1x128xf32, #tpu.memory_space<vmem>>, vector<1x128xf32>
    %23 = vector.broadcast %22 : vector<1x128xf32> to vector<16x128xf32>
    %24 = arith.addf %21, %23 : vector<16x128xf32>
    %c0_20 = arith.constant 0 : index
    %c0_21 = arith.constant 0 : index
    %25 = vector.load %arg11[%c0_20, %c0_21] : memref<16x128xf32, #tpu.memory_space<vmem>>, vector<16x128xf32>
    tpu.vector_store %arg11[%c0_20, %c0_21], %24 {strides = array<i32>} : memref<16x128xf32, #tpu.memory_space<vmem>>, vector<16x128xf32>,
    %c0_22 = arith.constant 0 : index
    %c0_23 = arith.constant 0 : index
    %26 = vector.load %arg9[%c0_22, %c0_23] : memref<256x128xbf16, #tpu.memory_space<vmem>>, vector<256x128xbf16>
    %cst_24 = arith.constant dense<0.000000e+00> : vector<16x128xf32>
    %27 = tpu.matmul %16, %26, %cst_24 {dimension_numbers = #tpu.dot_dimension_numbers<[1], [0], [0], [1], [0, 0, 1, 1], [], []>} : vector<16x256xbf16>, vector<256x128xbf16>, vector<16x128xf32> -> vector<16x128xf32>
    %c0_25 = arith.constant 0 : index
    %c0_26 = arith.constant 0 : index
    %28 = vector.load %arg10[%c0_25, %c0_26] : memref<1x128xf32, #tpu.memory_space<vmem>>, vector<1x128xf32>
    %29 = vector.broadcast %28 : vector<1x128xf32> to vector<16x128xf32>
    %30 = arith.addf %27, %29 : vector<16x128xf32>
    %cst_27 = arith.constant 0.000000e+00 : f32
    %31 = vector.broadcast %cst_27 : f32 to vector<16x128xf32>
    %32 = arith.maximumf %30, %31 : vector<16x128xf32>
    %33 = math.absf %30 : vector<16x128xf32>
    %cst_28 = arith.constant 0.000000e+00 : f32
    %34 = vector.broadcast %cst_28 : f32 to vector<16x128xf32>
    %35 = arith.subf %34, %33 : vector<16x128xf32>
    %36 = math.exp %35 : vector<16x128xf32>
    %cst_29 = arith.constant 1.000000e+00 : f32
    %37 = vector.broadcast %cst_29 : f32 to vector<16x128xf32>
    %38 = arith.addf %37, %36 : vector<16x128xf32>
    %39 = math.log %38 : vector<16x128xf32>
    %40 = arith.addf %32, %39 : vector<16x128xf32>
    %c0_30 = arith.constant 0 : index
    %c0_31 = arith.constant 0 : index
    %41 = vector.load %arg12[%c0_30, %c0_31] : memref<16x128xf32, #tpu.memory_space<vmem>>, vector<16x128xf32>
    tpu.vector_store %arg12[%c0_30, %c0_31], %40 {strides = array<i32>} : memref<16x128xf32, #tpu.memory_space<vmem>>, vector<16x128xf32>,
    return
  }
  func.func @transform_0(%arg0: i32) -> (i32, i32) {
    %c0_i32 = arith.constant 0 : i32
    %c0_i32_0 = arith.constant 0 : i32
    return %arg0, %c0_i32 : i32, i32
  }
  func.func @transform_1(%arg0: i32) -> (i32, i32) {
    %c0_i32 = arith.constant 0 : i32
    %c0_i32_0 = arith.constant 0 : i32
    %c0_i32_1 = arith.constant 0 : i32
    return %c0_i32, %c0_i32_0 : i32, i32
  }
  func.func @transform_2(%arg0: i32) -> (i32, i32) {
    %c0_i32 = arith.constant 0 : i32
    %c0_i32_0 = arith.constant 0 : i32
    %c0_i32_1 = arith.constant 0 : i32
    return %c0_i32, %c0_i32_0 : i32, i32
  }
  func.func @transform_3(%arg0: i32) -> (i32, i32) {
    %c0_i32 = arith.constant 0 : i32
    %c0_i32_0 = arith.constant 0 : i32
    %c0_i32_1 = arith.constant 0 : i32
    return %c0_i32, %c0_i32_0 : i32, i32
  }
  func.func @transform_4(%arg0: i32) -> (i32, i32) {
    %c0_i32 = arith.constant 0 : i32
    %c0_i32_0 = arith.constant 0 : i32
    %c0_i32_1 = arith.constant 0 : i32
    return %c0_i32, %c0_i32_0 : i32, i32
  }
  func.func @transform_5(%arg0: i32) -> (i32, i32) {
    %c0_i32 = arith.constant 0 : i32
    %c0_i32_0 = arith.constant 0 : i32
    %c0_i32_1 = arith.constant 0 : i32
    return %c0_i32, %c0_i32_0 : i32, i32
  }
  func.func @transform_6(%arg0: i32) -> (i32, i32) {
    %c0_i32 = arith.constant 0 : i32
    %c0_i32_0 = arith.constant 0 : i32
    %c0_i32_1 = arith.constant 0 : i32
    return %c0_i32, %c0_i32_0 : i32, i32
  }
  func.func @transform_7(%arg0: i32) -> (i32, i32) {
    %c0_i32 = arith.constant 0 : i32
    %c0_i32_0 = arith.constant 0 : i32
    %c0_i32_1 = arith.constant 0 : i32
    return %c0_i32, %c0_i32_0 : i32, i32
  }
  func.func @transform_8(%arg0: i32) -> (i32, i32) {
    %c0_i32 = arith.constant 0 : i32
    %c0_i32_0 = arith.constant 0 : i32
    %c0_i32_1 = arith.constant 0 : i32
    return %c0_i32, %c0_i32_0 : i32, i32
  }
  func.func @transform_9(%arg0: i32) -> (i32, i32) {
    %c0_i32 = arith.constant 0 : i32
    %c0_i32_0 = arith.constant 0 : i32
    %c0_i32_1 = arith.constant 0 : i32
    return %c0_i32, %c0_i32_0 : i32, i32
  }
  func.func @transform_10(%arg0: i32) -> (i32, i32) {
    %c0_i32 = arith.constant 0 : i32
    %c0_i32_0 = arith.constant 0 : i32
    return %arg0, %c0_i32 : i32, i32
  }
  func.func @transform_11(%arg0: i32) -> (i32, i32) {
    %c0_i32 = arith.constant 0 : i32
    %c0_i32_0 = arith.constant 0 : i32
    return %arg0, %c0_i32 : i32, i32
  }
}

module attributes {stable_mosaic.version = 11 : i64} {
  func.func @_upsample_kernel(%arg0: i32, %arg1: memref<8x4x4xbf16, #tpu.memory_space<vmem>>, %arg2: memref<16x4xbf16, #tpu.memory_space<vmem>>, %arg3: memref<4x16xbf16, #tpu.memory_space<vmem>>, %arg4: memref<8x16x16xf32, #tpu.memory_space<vmem>>) attributes {dimension_semantics = [#tpu.dimension_semantics<parallel>], iteration_bounds = array<i64: 4>, scalar_prefetch = 0 : i64, scratch_operands = 0 : i64, tpu.core_type = #tpu.core_type<tc>, window_params = [{transform_indices = @transform_0, window_bounds = array<i64: 8, 4, 4>}, {pipeline_mode = #tpu.pipeline_mode<synchronous>, transform_indices = @transform_1, window_bounds = array<i64: 16, 4>}, {pipeline_mode = #tpu.pipeline_mode<synchronous>, transform_indices = @transform_2, window_bounds = array<i64: 4, 16>}, {transform_indices = @transform_3, window_bounds = array<i64: 8, 16, 16>}]} {
    %c0 = arith.constant 0 : index
    %c0_0 = arith.constant 0 : index
    %0 = vector.load %arg2[%c0, %c0_0] : memref<16x4xbf16, #tpu.memory_space<vmem>>, vector<16x4xbf16>
    %c0_1 = arith.constant 0 : index
    %c0_2 = arith.constant 0 : index
    %1 = vector.load %arg3[%c0_1, %c0_2] : memref<4x16xbf16, #tpu.memory_space<vmem>>, vector<4x16xbf16>
    %c0_3 = arith.constant 0 : index
    %c0_4 = arith.constant 0 : index
    %c0_5 = arith.constant 0 : index
    %2 = vector.load %arg1[%c0_3, %c0_4, %c0_5] : memref<8x4x4xbf16, #tpu.memory_space<vmem>>, vector<1x4x4xbf16>
    %3 = vector.shape_cast %2 : vector<1x4x4xbf16> to vector<4x4xbf16>
    %cst = arith.constant dense<0.000000e+00> : vector<16x4xf32>
    %4 = tpu.matmul %0, %3, %cst {dimension_numbers = #tpu.dot_dimension_numbers<[1], [0], [0], [1], [0, 0, 1, 1], [], []>} : vector<16x4xbf16>, vector<4x4xbf16>, vector<16x4xf32> -> vector<16x4xf32>
    %5 = arith.truncf %4 : vector<16x4xf32> to vector<16x4xbf16>
    %cst_6 = arith.constant dense<0.000000e+00> : vector<16x16xf32>
    %6 = tpu.matmul %5, %1, %cst_6 {dimension_numbers = #tpu.dot_dimension_numbers<[1], [0], [0], [1], [0, 0, 1, 1], [], []>} : vector<16x4xbf16>, vector<4x16xbf16>, vector<16x16xf32> -> vector<16x16xf32>
    %c0_7 = arith.constant 0 : index
    %c0_8 = arith.constant 0 : index
    %c0_9 = arith.constant 0 : index
    %7 = vector.load %arg4[%c0_7, %c0_8, %c0_9] : memref<8x16x16xf32, #tpu.memory_space<vmem>>, vector<1x16x16xf32>
    %8 = vector.shape_cast %7 : vector<1x16x16xf32> to vector<16x16xf32>
    %9 = vector.shape_cast %6 : vector<16x16xf32> to vector<1x16x16xf32>
    tpu.vector_store %arg4[%c0_7, %c0_8, %c0_9], %9 {strides = array<i32>} : memref<8x16x16xf32, #tpu.memory_space<vmem>>, vector<1x16x16xf32>,
    %c1 = arith.constant 1 : index
    %c0_10 = arith.constant 0 : index
    %c0_11 = arith.constant 0 : index
    %10 = vector.load %arg1[%c1, %c0_10, %c0_11] : memref<8x4x4xbf16, #tpu.memory_space<vmem>>, vector<1x4x4xbf16>
    %11 = vector.shape_cast %10 : vector<1x4x4xbf16> to vector<4x4xbf16>
    %cst_12 = arith.constant dense<0.000000e+00> : vector<16x4xf32>
    %12 = tpu.matmul %0, %11, %cst_12 {dimension_numbers = #tpu.dot_dimension_numbers<[1], [0], [0], [1], [0, 0, 1, 1], [], []>} : vector<16x4xbf16>, vector<4x4xbf16>, vector<16x4xf32> -> vector<16x4xf32>
    %13 = arith.truncf %12 : vector<16x4xf32> to vector<16x4xbf16>
    %cst_13 = arith.constant dense<0.000000e+00> : vector<16x16xf32>
    %14 = tpu.matmul %13, %1, %cst_13 {dimension_numbers = #tpu.dot_dimension_numbers<[1], [0], [0], [1], [0, 0, 1, 1], [], []>} : vector<16x4xbf16>, vector<4x16xbf16>, vector<16x16xf32> -> vector<16x16xf32>
    %c1_14 = arith.constant 1 : index
    %c0_15 = arith.constant 0 : index
    %c0_16 = arith.constant 0 : index
    %15 = vector.load %arg4[%c1_14, %c0_15, %c0_16] : memref<8x16x16xf32, #tpu.memory_space<vmem>>, vector<1x16x16xf32>
    %16 = vector.shape_cast %15 : vector<1x16x16xf32> to vector<16x16xf32>
    %17 = vector.shape_cast %14 : vector<16x16xf32> to vector<1x16x16xf32>
    tpu.vector_store %arg4[%c1_14, %c0_15, %c0_16], %17 {strides = array<i32>} : memref<8x16x16xf32, #tpu.memory_space<vmem>>, vector<1x16x16xf32>,
    %c2 = arith.constant 2 : index
    %c0_17 = arith.constant 0 : index
    %c0_18 = arith.constant 0 : index
    %18 = vector.load %arg1[%c2, %c0_17, %c0_18] : memref<8x4x4xbf16, #tpu.memory_space<vmem>>, vector<1x4x4xbf16>
    %19 = vector.shape_cast %18 : vector<1x4x4xbf16> to vector<4x4xbf16>
    %cst_19 = arith.constant dense<0.000000e+00> : vector<16x4xf32>
    %20 = tpu.matmul %0, %19, %cst_19 {dimension_numbers = #tpu.dot_dimension_numbers<[1], [0], [0], [1], [0, 0, 1, 1], [], []>} : vector<16x4xbf16>, vector<4x4xbf16>, vector<16x4xf32> -> vector<16x4xf32>
    %21 = arith.truncf %20 : vector<16x4xf32> to vector<16x4xbf16>
    %cst_20 = arith.constant dense<0.000000e+00> : vector<16x16xf32>
    %22 = tpu.matmul %21, %1, %cst_20 {dimension_numbers = #tpu.dot_dimension_numbers<[1], [0], [0], [1], [0, 0, 1, 1], [], []>} : vector<16x4xbf16>, vector<4x16xbf16>, vector<16x16xf32> -> vector<16x16xf32>
    %c2_21 = arith.constant 2 : index
    %c0_22 = arith.constant 0 : index
    %c0_23 = arith.constant 0 : index
    %23 = vector.load %arg4[%c2_21, %c0_22, %c0_23] : memref<8x16x16xf32, #tpu.memory_space<vmem>>, vector<1x16x16xf32>
    %24 = vector.shape_cast %23 : vector<1x16x16xf32> to vector<16x16xf32>
    %25 = vector.shape_cast %22 : vector<16x16xf32> to vector<1x16x16xf32>
    tpu.vector_store %arg4[%c2_21, %c0_22, %c0_23], %25 {strides = array<i32>} : memref<8x16x16xf32, #tpu.memory_space<vmem>>, vector<1x16x16xf32>,
    %c3 = arith.constant 3 : index
    %c0_24 = arith.constant 0 : index
    %c0_25 = arith.constant 0 : index
    %26 = vector.load %arg1[%c3, %c0_24, %c0_25] : memref<8x4x4xbf16, #tpu.memory_space<vmem>>, vector<1x4x4xbf16>
    %27 = vector.shape_cast %26 : vector<1x4x4xbf16> to vector<4x4xbf16>
    %cst_26 = arith.constant dense<0.000000e+00> : vector<16x4xf32>
    %28 = tpu.matmul %0, %27, %cst_26 {dimension_numbers = #tpu.dot_dimension_numbers<[1], [0], [0], [1], [0, 0, 1, 1], [], []>} : vector<16x4xbf16>, vector<4x4xbf16>, vector<16x4xf32> -> vector<16x4xf32>
    %29 = arith.truncf %28 : vector<16x4xf32> to vector<16x4xbf16>
    %cst_27 = arith.constant dense<0.000000e+00> : vector<16x16xf32>
    %30 = tpu.matmul %29, %1, %cst_27 {dimension_numbers = #tpu.dot_dimension_numbers<[1], [0], [0], [1], [0, 0, 1, 1], [], []>} : vector<16x4xbf16>, vector<4x16xbf16>, vector<16x16xf32> -> vector<16x16xf32>
    %c3_28 = arith.constant 3 : index
    %c0_29 = arith.constant 0 : index
    %c0_30 = arith.constant 0 : index
    %31 = vector.load %arg4[%c3_28, %c0_29, %c0_30] : memref<8x16x16xf32, #tpu.memory_space<vmem>>, vector<1x16x16xf32>
    %32 = vector.shape_cast %31 : vector<1x16x16xf32> to vector<16x16xf32>
    %33 = vector.shape_cast %30 : vector<16x16xf32> to vector<1x16x16xf32>
    tpu.vector_store %arg4[%c3_28, %c0_29, %c0_30], %33 {strides = array<i32>} : memref<8x16x16xf32, #tpu.memory_space<vmem>>, vector<1x16x16xf32>,
    %c4 = arith.constant 4 : index
    %c0_31 = arith.constant 0 : index
    %c0_32 = arith.constant 0 : index
    %34 = vector.load %arg1[%c4, %c0_31, %c0_32] : memref<8x4x4xbf16, #tpu.memory_space<vmem>>, vector<1x4x4xbf16>
    %35 = vector.shape_cast %34 : vector<1x4x4xbf16> to vector<4x4xbf16>
    %cst_33 = arith.constant dense<0.000000e+00> : vector<16x4xf32>
    %36 = tpu.matmul %0, %35, %cst_33 {dimension_numbers = #tpu.dot_dimension_numbers<[1], [0], [0], [1], [0, 0, 1, 1], [], []>} : vector<16x4xbf16>, vector<4x4xbf16>, vector<16x4xf32> -> vector<16x4xf32>
    %37 = arith.truncf %36 : vector<16x4xf32> to vector<16x4xbf16>
    %cst_34 = arith.constant dense<0.000000e+00> : vector<16x16xf32>
    %38 = tpu.matmul %37, %1, %cst_34 {dimension_numbers = #tpu.dot_dimension_numbers<[1], [0], [0], [1], [0, 0, 1, 1], [], []>} : vector<16x4xbf16>, vector<4x16xbf16>, vector<16x16xf32> -> vector<16x16xf32>
    %c4_35 = arith.constant 4 : index
    %c0_36 = arith.constant 0 : index
    %c0_37 = arith.constant 0 : index
    %39 = vector.load %arg4[%c4_35, %c0_36, %c0_37] : memref<8x16x16xf32, #tpu.memory_space<vmem>>, vector<1x16x16xf32>
    %40 = vector.shape_cast %39 : vector<1x16x16xf32> to vector<16x16xf32>
    %41 = vector.shape_cast %38 : vector<16x16xf32> to vector<1x16x16xf32>
    tpu.vector_store %arg4[%c4_35, %c0_36, %c0_37], %41 {strides = array<i32>} : memref<8x16x16xf32, #tpu.memory_space<vmem>>, vector<1x16x16xf32>,
    %c5 = arith.constant 5 : index
    %c0_38 = arith.constant 0 : index
    %c0_39 = arith.constant 0 : index
    %42 = vector.load %arg1[%c5, %c0_38, %c0_39] : memref<8x4x4xbf16, #tpu.memory_space<vmem>>, vector<1x4x4xbf16>
    %43 = vector.shape_cast %42 : vector<1x4x4xbf16> to vector<4x4xbf16>
    %cst_40 = arith.constant dense<0.000000e+00> : vector<16x4xf32>
    %44 = tpu.matmul %0, %43, %cst_40 {dimension_numbers = #tpu.dot_dimension_numbers<[1], [0], [0], [1], [0, 0, 1, 1], [], []>} : vector<16x4xbf16>, vector<4x4xbf16>, vector<16x4xf32> -> vector<16x4xf32>
    %45 = arith.truncf %44 : vector<16x4xf32> to vector<16x4xbf16>
    %cst_41 = arith.constant dense<0.000000e+00> : vector<16x16xf32>
    %46 = tpu.matmul %45, %1, %cst_41 {dimension_numbers = #tpu.dot_dimension_numbers<[1], [0], [0], [1], [0, 0, 1, 1], [], []>} : vector<16x4xbf16>, vector<4x16xbf16>, vector<16x16xf32> -> vector<16x16xf32>
    %c5_42 = arith.constant 5 : index
    %c0_43 = arith.constant 0 : index
    %c0_44 = arith.constant 0 : index
    %47 = vector.load %arg4[%c5_42, %c0_43, %c0_44] : memref<8x16x16xf32, #tpu.memory_space<vmem>>, vector<1x16x16xf32>
    %48 = vector.shape_cast %47 : vector<1x16x16xf32> to vector<16x16xf32>
    %49 = vector.shape_cast %46 : vector<16x16xf32> to vector<1x16x16xf32>
    tpu.vector_store %arg4[%c5_42, %c0_43, %c0_44], %49 {strides = array<i32>} : memref<8x16x16xf32, #tpu.memory_space<vmem>>, vector<1x16x16xf32>,
    %c6 = arith.constant 6 : index
    %c0_45 = arith.constant 0 : index
    %c0_46 = arith.constant 0 : index
    %50 = vector.load %arg1[%c6, %c0_45, %c0_46] : memref<8x4x4xbf16, #tpu.memory_space<vmem>>, vector<1x4x4xbf16>
    %51 = vector.shape_cast %50 : vector<1x4x4xbf16> to vector<4x4xbf16>
    %cst_47 = arith.constant dense<0.000000e+00> : vector<16x4xf32>
    %52 = tpu.matmul %0, %51, %cst_47 {dimension_numbers = #tpu.dot_dimension_numbers<[1], [0], [0], [1], [0, 0, 1, 1], [], []>} : vector<16x4xbf16>, vector<4x4xbf16>, vector<16x4xf32> -> vector<16x4xf32>
    %53 = arith.truncf %52 : vector<16x4xf32> to vector<16x4xbf16>
    %cst_48 = arith.constant dense<0.000000e+00> : vector<16x16xf32>
    %54 = tpu.matmul %53, %1, %cst_48 {dimension_numbers = #tpu.dot_dimension_numbers<[1], [0], [0], [1], [0, 0, 1, 1], [], []>} : vector<16x4xbf16>, vector<4x16xbf16>, vector<16x16xf32> -> vector<16x16xf32>
    %c6_49 = arith.constant 6 : index
    %c0_50 = arith.constant 0 : index
    %c0_51 = arith.constant 0 : index
    %55 = vector.load %arg4[%c6_49, %c0_50, %c0_51] : memref<8x16x16xf32, #tpu.memory_space<vmem>>, vector<1x16x16xf32>
    %56 = vector.shape_cast %55 : vector<1x16x16xf32> to vector<16x16xf32>
    %57 = vector.shape_cast %54 : vector<16x16xf32> to vector<1x16x16xf32>
    tpu.vector_store %arg4[%c6_49, %c0_50, %c0_51], %57 {strides = array<i32>} : memref<8x16x16xf32, #tpu.memory_space<vmem>>, vector<1x16x16xf32>,
    %c7 = arith.constant 7 : index
    %c0_52 = arith.constant 0 : index
    %c0_53 = arith.constant 0 : index
    %58 = vector.load %arg1[%c7, %c0_52, %c0_53] : memref<8x4x4xbf16, #tpu.memory_space<vmem>>, vector<1x4x4xbf16>
    %59 = vector.shape_cast %58 : vector<1x4x4xbf16> to vector<4x4xbf16>
    %cst_54 = arith.constant dense<0.000000e+00> : vector<16x4xf32>
    %60 = tpu.matmul %0, %59, %cst_54 {dimension_numbers = #tpu.dot_dimension_numbers<[1], [0], [0], [1], [0, 0, 1, 1], [], []>} : vector<16x4xbf16>, vector<4x4xbf16>, vector<16x4xf32> -> vector<16x4xf32>
    %61 = arith.truncf %60 : vector<16x4xf32> to vector<16x4xbf16>
    %cst_55 = arith.constant dense<0.000000e+00> : vector<16x16xf32>
    %62 = tpu.matmul %61, %1, %cst_55 {dimension_numbers = #tpu.dot_dimension_numbers<[1], [0], [0], [1], [0, 0, 1, 1], [], []>} : vector<16x4xbf16>, vector<4x16xbf16>, vector<16x16xf32> -> vector<16x16xf32>
    %c7_56 = arith.constant 7 : index
    %c0_57 = arith.constant 0 : index
    %c0_58 = arith.constant 0 : index
    %63 = vector.load %arg4[%c7_56, %c0_57, %c0_58] : memref<8x16x16xf32, #tpu.memory_space<vmem>>, vector<1x16x16xf32>
    %64 = vector.shape_cast %63 : vector<1x16x16xf32> to vector<16x16xf32>
    %65 = vector.shape_cast %62 : vector<16x16xf32> to vector<1x16x16xf32>
    tpu.vector_store %arg4[%c7_56, %c0_57, %c0_58], %65 {strides = array<i32>} : memref<8x16x16xf32, #tpu.memory_space<vmem>>, vector<1x16x16xf32>,
    return
  }
  func.func @transform_0(%arg0: i32) -> (i32, i32, i32) {
    %c0_i32 = arith.constant 0 : i32
    %c0_i32_0 = arith.constant 0 : i32
    %c0_i32_1 = arith.constant 0 : i32
    return %arg0, %c0_i32, %c0_i32_0 : i32, i32, i32
  }
  func.func @transform_1(%arg0: i32) -> (i32, i32) {
    %c0_i32 = arith.constant 0 : i32
    %c0_i32_0 = arith.constant 0 : i32
    %c0_i32_1 = arith.constant 0 : i32
    return %c0_i32, %c0_i32_0 : i32, i32
  }
  func.func @transform_2(%arg0: i32) -> (i32, i32) {
    %c0_i32 = arith.constant 0 : i32
    %c0_i32_0 = arith.constant 0 : i32
    %c0_i32_1 = arith.constant 0 : i32
    return %c0_i32, %c0_i32_0 : i32, i32
  }
  func.func @transform_3(%arg0: i32) -> (i32, i32, i32) {
    %c0_i32 = arith.constant 0 : i32
    %c0_i32_0 = arith.constant 0 : i32
    %c0_i32_1 = arith.constant 0 : i32
    return %arg0, %c0_i32, %c0_i32_0 : i32, i32, i32
  }
}

module attributes {stable_mosaic.version = 11 : i64} {
  func.func @_ema_kernel(%arg0: i32, %arg1: i32, %arg2: memref<1x8x4x4xbf16, #tpu.memory_space<vmem>>, %arg3: memref<16x4xbf16, #tpu.memory_space<vmem>>, %arg4: memref<4x16xbf16, #tpu.memory_space<vmem>>, %arg5: memref<1x8x16x16xf32, #tpu.memory_space<vmem>>, %arg6: memref<1x16x16xf32, #tpu.memory_space<vmem>>, %arg7: memref<1x16x16xi32, #tpu.memory_space<vmem>>) attributes {dimension_semantics = [#tpu.dimension_semantics<parallel>, #tpu.dimension_semantics<parallel>], iteration_bounds = array<i64: 2, 1>, scalar_prefetch = 0 : i64, scratch_operands = 0 : i64, tpu.core_type = #tpu.core_type<tc>, window_params = [{transform_indices = @transform_0, window_bounds = array<i64: 1, 8, 4, 4>}, {transform_indices = @transform_1, window_bounds = array<i64: 16, 4>}, {pipeline_mode = #tpu.pipeline_mode<synchronous>, transform_indices = @transform_2, window_bounds = array<i64: 4, 16>}, {transform_indices = @transform_3, window_bounds = array<i64: 1, 8, 16, 16>}, {transform_indices = @transform_4, window_bounds = array<i64: 1, 16, 16>}, {transform_indices = @transform_5, window_bounds = array<i64: 1, 16, 16>}]} {
    %c0 = arith.constant 0 : index
    %c0_0 = arith.constant 0 : index
    %0 = vector.load %arg3[%c0, %c0_0] : memref<16x4xbf16, #tpu.memory_space<vmem>>, vector<16x4xbf16>
    %c0_1 = arith.constant 0 : index
    %c0_2 = arith.constant 0 : index
    %1 = vector.load %arg4[%c0_1, %c0_2] : memref<4x16xbf16, #tpu.memory_space<vmem>>, vector<4x16xbf16>
    %cst = arith.constant 0xFF800000 : f32
    %2 = vector.broadcast %cst : f32 to vector<16x16xf32>
    %c0_i32 = arith.constant 0 : i32
    %c8_i32 = arith.constant 8 : i32
    %3 = arith.addi %c0_i32, %c8_i32 : i32
    %c1_i32 = arith.constant 1 : i32
    %4 = scf.for %arg8 = %c0_i32 to %3 step %c1_i32 iter_args(%arg9 = %2) -> (vector<16x16xf32>)  : i32 {
      %c0_17 = arith.constant 0 : index
      %17 = arith.index_cast %arg8 : i32 to index
      %c0_18 = arith.constant 0 : index
      %c0_19 = arith.constant 0 : index
      %18 = vector.load %arg2[%c0_17, %17, %c0_18, %c0_19] : memref<1x8x4x4xbf16, #tpu.memory_space<vmem>>, vector<1x1x4x4xbf16>
      %19 = vector.shape_cast %18 : vector<1x1x4x4xbf16> to vector<4x4xbf16>
      %cst_20 = arith.constant dense<0.000000e+00> : vector<16x4xf32>
      %20 = tpu.matmul %0, %19, %cst_20 {dimension_numbers = #tpu.dot_dimension_numbers<[1], [0], [0], [1], [0, 0, 1, 1], [], []>} : vector<16x4xbf16>, vector<4x4xbf16>, vector<16x4xf32> -> vector<16x4xf32>
      %21 = arith.truncf %20 : vector<16x4xf32> to vector<16x4xbf16>
      %cst_21 = arith.constant dense<0.000000e+00> : vector<16x16xf32>
      %22 = tpu.matmul %21, %1, %cst_21 {dimension_numbers = #tpu.dot_dimension_numbers<[1], [0], [0], [1], [0, 0, 1, 1], [], []>} : vector<16x4xbf16>, vector<4x16xbf16>, vector<16x16xf32> -> vector<16x16xf32>
      %c0_22 = arith.constant 0 : index
      %23 = arith.index_cast %arg8 : i32 to index
      %c0_23 = arith.constant 0 : index
      %c0_24 = arith.constant 0 : index
      %24 = vector.load %arg5[%c0_22, %23, %c0_23, %c0_24] : memref<1x8x16x16xf32, #tpu.memory_space<vmem>>, vector<1x1x16x16xf32>
      %25 = vector.shape_cast %24 : vector<1x1x16x16xf32> to vector<16x16xf32>
      %26 = vector.shape_cast %22 : vector<16x16xf32> to vector<1x1x16x16xf32>
      tpu.vector_store %arg5[%c0_22, %23, %c0_23, %c0_24], %26 {strides = array<i32>} : memref<1x8x16x16xf32, #tpu.memory_space<vmem>>, vector<1x1x16x16xf32>,
      %27 = arith.maximumf %arg9, %22 : vector<16x16xf32>
      scf.yield %27 : vector<16x16xf32>
    }
    %c8_i32_3 = arith.constant 8 : i32
    %cst_4 = arith.constant 0.000000e+00 : f32
    %5 = vector.broadcast %cst_4 : f32 to vector<16x16xf32>
    %cst_5 = arith.constant 0xFF800000 : f32
    %6 = vector.broadcast %cst_5 : f32 to vector<16x16xf32>
    %c0_i32_6 = arith.constant 0 : i32
    %7 = vector.broadcast %c0_i32_6 : i32 to vector<16x16xi32>
    %c0_i32_7 = arith.constant 0 : i32
    %c8_i32_8 = arith.constant 8 : i32
    %8 = arith.addi %c0_i32_7, %c8_i32_8 : i32
    %c1_i32_9 = arith.constant 1 : i32
    %9:3 = scf.for %arg8 = %c0_i32_7 to %8 step %c1_i32_9 iter_args(%arg9 = %5, %arg10 = %6, %arg11 = %7) -> (vector<16x16xf32>, vector<16x16xf32>, vector<16x16xi32>)  : i32 {
      %c0_17 = arith.constant 0 : index
      %17 = arith.index_cast %arg8 : i32 to index
      %c0_18 = arith.constant 0 : index
      %c0_19 = arith.constant 0 : index
      %18 = vector.load %arg5[%c0_17, %17, %c0_18, %c0_19] : memref<1x8x16x16xf32, #tpu.memory_space<vmem>>, vector<1x1x16x16xf32>
      %19 = vector.shape_cast %18 : vector<1x1x16x16xf32> to vector<16x16xf32>
      %20 = arith.subf %19, %4 : vector<16x16xf32>
      %21 = math.exp %20 : vector<16x16xf32>
      %22 = arith.cmpf ogt, %21, %arg10 : vector<16x16xf32>
      %23 = arith.addf %arg9, %21 : vector<16x16xf32>
      %24 = arith.select %22, %21, %arg10 : vector<16x16xi1>, vector<16x16xf32>
      %25 = vector.broadcast %arg8 : i32 to vector<16x16xi32>
      %26 = arith.select %22, %25, %arg11 : vector<16x16xi1>, vector<16x16xi32>
      scf.yield %23, %24, %26 : vector<16x16xf32>, vector<16x16xf32>, vector<16x16xi32>
    }
    %c8_i32_10 = arith.constant 8 : i32
    %10 = arith.divf %9#1, %9#0 : vector<16x16xf32>
    %c0_11 = arith.constant 0 : index
    %c0_12 = arith.constant 0 : index
    %c0_13 = arith.constant 0 : index
    %11 = vector.load %arg6[%c0_11, %c0_12, %c0_13] : memref<1x16x16xf32, #tpu.memory_space<vmem>>, vector<1x16x16xf32>
    %12 = vector.shape_cast %11 : vector<1x16x16xf32> to vector<16x16xf32>
    %13 = vector.shape_cast %10 : vector<16x16xf32> to vector<1x16x16xf32>
    tpu.vector_store %arg6[%c0_11, %c0_12, %c0_13], %13 {strides = array<i32>} : memref<1x16x16xf32, #tpu.memory_space<vmem>>, vector<1x16x16xf32>,
    %c0_14 = arith.constant 0 : index
    %c0_15 = arith.constant 0 : index
    %c0_16 = arith.constant 0 : index
    %14 = vector.load %arg7[%c0_14, %c0_15, %c0_16] : memref<1x16x16xi32, #tpu.memory_space<vmem>>, vector<1x16x16xi32>
    %15 = vector.shape_cast %14 : vector<1x16x16xi32> to vector<16x16xi32>
    %16 = vector.shape_cast %9#2 : vector<16x16xi32> to vector<1x16x16xi32>
    tpu.vector_store %arg7[%c0_14, %c0_15, %c0_16], %16 {strides = array<i32>} : memref<1x16x16xi32, #tpu.memory_space<vmem>>, vector<1x16x16xi32>,
    return
  }
  func.func @transform_0(%arg0: i32, %arg1: i32) -> (i32, i32, i32, i32) {
    %c0_i32 = arith.constant 0 : i32
    %c0_i32_0 = arith.constant 0 : i32
    %c0_i32_1 = arith.constant 0 : i32
    %c0_i32_2 = arith.constant 0 : i32
    return %arg0, %c0_i32, %c0_i32_0, %c0_i32_1 : i32, i32, i32, i32
  }
  func.func @transform_1(%arg0: i32, %arg1: i32) -> (i32, i32) {
    %c0_i32 = arith.constant 0 : i32
    %c0_i32_0 = arith.constant 0 : i32
    return %arg1, %c0_i32 : i32, i32
  }
  func.func @transform_2(%arg0: i32, %arg1: i32) -> (i32, i32) {
    %c0_i32 = arith.constant 0 : i32
    %c0_i32_0 = arith.constant 0 : i32
    %c0_i32_1 = arith.constant 0 : i32
    return %c0_i32, %c0_i32_0 : i32, i32
  }
  func.func @transform_3(%arg0: i32, %arg1: i32) -> (i32, i32, i32, i32) {
    %c0_i32 = arith.constant 0 : i32
    %c0_i32_0 = arith.constant 0 : i32
    %c0_i32_1 = arith.constant 0 : i32
    return %arg0, %c0_i32, %arg1, %c0_i32_0 : i32, i32, i32, i32
  }
  func.func @transform_4(%arg0: i32, %arg1: i32) -> (i32, i32, i32) {
    %c0_i32 = arith.constant 0 : i32
    %c0_i32_0 = arith.constant 0 : i32
    return %arg0, %arg1, %c0_i32 : i32, i32, i32
  }
  func.func @transform_5(%arg0: i32, %arg1: i32) -> (i32, i32, i32) {
    %c0_i32 = arith.constant 0 : i32
    %c0_i32_0 = arith.constant 0 : i32
    return %arg0, %arg1, %c0_i32 : i32, i32, i32
  }
}

</mosaic_0001>

<bundles_post_ra>
// kernel: model_with_un_forward.6
= control target key start
LH: loop header
LB: loop body
LE: loop exit
PB: predicated region body
PF: predicated region fallthrough
CT: control target
= control target key end

     0   :  { %17 = vsyncpa [#allocation3], 0  ;;  %s2134_s0 = inlined_call_operand.vmem [shape: bf16[64,128], index: 0, kind: input, shape index: {}]   ;;  %s2135_s1 = inlined_call_operand.vmem [shape: bf16[128,128], index: 1, kind: input, shape index: {}]   ;;  %s2136_s2 = inlined_call_operand.vmem [shape: f32[1,128], index: 2, kind: input, shape index: {}]   ;;  %s2137_s3 = inlined_call_operand.vmem [shape: bf16[128,128], index: 3, kind: input, shape index: {}]   ;;  %s2138_s4 = inlined_call_operand.vmem [shape: bf16[128,256], index: 4, kind: input, shape index: {}]   ;;  %s2139_s5 = inlined_call_operand.vmem [shape: f32[1,256], index: 5, kind: input, shape index: {}]   ;;  %s2140_s6 = inlined_call_operand.vmem [shape: bf16[256,128], index: 6, kind: input, shape index: {}]   ;;  %s2141_s7 = inlined_call_operand.vmem [shape: f32[1,128], index: 7, kind: input, shape index: {}]   ;;  %s2142_s8 = inlined_call_operand.vmem [shape: bf16[256,128], index: 8, kind: input, shape index: {}]   ;;  %s2143_s9 = inlined_call_operand.vmem [shape: f32[1,128], index: 9, kind: input, shape index: {}]   ;;  %s2144_s10 = inlined_call_operand.vmem [shape: f32[64,128], index: 10, kind: output, shape index: {0}]   ;;  %s2145_s11 = inlined_call_operand.hbm [shape: f32[64,128], index: 11, kind: output, shape index: {1}]  }
   0x1   :  { %19 = vsyncpa [#allocation3 + $0x1], 0  ;;  %s1817_s17 = smov 0   ;;  %s1819_s18 = smov 0  }
   0x2   :  { %s1821_s19 = smov 0   ;;  %s1823_s20 = smov 0  }
   0x3 LB: > { %s1838_s21 = sadd.s32 4294967295, %s1751_s20   ;;  %s1357_s22 = sadd.s32 4294967294, %s1751_s20   ;;  %s1751_s20 = sphi %s1823_s20, %s2153_s20   ;;  %s1747_s19 = sphi %s1821_s19, %s2152_s19   ;;  %s1743_s18 = sphi %s1819_s18, %s2151_s18   ;;  %s1739_s17 = sphi %s1817_s17, %s2150_s17  }
   0x4   : > { %s1842_s23 = sadd.s32 1, %s1751_s20   ;;  %s273_s24 = sadd.s32 1, %s1747_s19 }
   0x5   : > { %s270_s25 = ssub.s32 %s1751_s20, %s1842_s23  ;;  %p283_p0 = scmp.ne.s32.totalorder %s1747_s19, %s1743_s18 }
   0x6   : > { %p271_p1 = scmp.eq.s32.totalorder %s270_s25, 0  ;;  %p284_p2 = scmp.eq.s32.totalorder %s1838_s21, 1 }
   0x7   : > { %p289_p3 = scmp.ne.s32.totalorder %s1743_s18, %s1739_s17  ;;  %p290_p4 = scmp.eq.s32.totalorder %s1357_s22, 1 }
   0x8   : > { %s1853_s26 = scalar_select %p271_p1, %s1747_s19, %s273_s24  }
   0x9   : > { %p1855_p5 = por %p284_p2, %p283_p0  ;;  %p1859_p6 = por %p290_p4, %p289_p3 }
   0xa   : > { %2146 = sst [smem:[#allocation5_spill]] %s1853_s26  ;;  %p1360_p7 = scmp.ge.s32.totalorder %s1751_s20, 1 }
   0xb   : > { %p344_p8 = scmp.lt.s32.totalorder %s1751_s20, 3 }
   0xd   : > { %p345_p9 = pnand %p1360_p7, %p344_p8 }
   0xe   : > { %v1599_v0 = vld [vmem:[%s2135_s1] sm:$0xff] (!%p345_p9)   ;;  %s1362_s12 = sshll.u32 (!%p345_p9), %s1838_s21, 2  ;;  %v1600_v1 = vld [vmem:[%s2135_s1 + $0x8] sm:$0xff] (!%p345_p9)   ;;  %v1601_v2 = vld [vmem:[%s2135_s1 + $0x10] sm:$0xff] (!%p345_p9)   ;;  %v1753_v27 = vmov (!%p345_p9), 0   ;;  %s386_s15 = sand.u32 (!%p345_p9), 1, %s1743_s18  }
   0xf   : > { %348 = sbr.rel (%p345_p9) target bundleno = 798 (0x31e), region = 60  ;;  %p390_p10 = scmp.lt.s32.totalorder (!%p345_p9), %s1362_s12, 7  ;;  %1517 = vmatprep.subr.bf16.mxu1 (!%p345_p9), %v1599_v0  ;;  %v1602_v3 = vld [vmem:[%s2135_s1 + $0x18] sm:$0xff] (!%p345_p9)   ;;  %v1603_v5 = vld [vmem:[%s2135_s1 + $0x20] sm:$0xff] (!%p345_p9)   ;;  %v1604_v6 = vld [vmem:[%s2135_s1 + $0x28] sm:$0xff] (!%p345_p9)  }
  0x10   : > { %1518 = vmatpush3.bf16.msra.mxu1 (!%p345_p9), %v1599_v0  ;;  %v1605_v7 = vld [vmem:[%s2135_s1 + $0x30] sm:$0xff] (!%p345_p9)   ;;  %v1606_v8 = vld [vmem:[%s2135_s1 + $0x38] sm:$0xff] (!%p345_p9)   ;;  %v1611_v9 = vld [vmem:[%s2138_s4 + $0x4] ss:$8 sps:$4 sm:$0xff] (!%p345_p9)   ;;  %s1361_s16 = sshll.u32 (!%p345_p9), %s386_s15, 5 }
  0x11   : > { %1519 = vmatprep.subr.bf16.mxu1 (!%p345_p9), %v1600_v1  ;;  %v1609_v11 = vld [vmem:[%s2138_s4] ss:$8 sps:$4 sm:$0xff] (!%p345_p9)   ;;  %v1614_v12 = vld [vmem:[%s2138_s4 + $0x14] ss:$8 sps:$4 sm:$0xff] (!%p345_p9)   ;;  %v1612_v13 = vld [vmem:[%s2138_s4 + $0x10] ss:$8 sps:$4 sm:$0xff] (!%p345_p9)  }
  0x12   : > { %v1617_v14 = vld [vmem:[%s2138_s4 + $0x24] ss:$8 sps:$4 sm:$0xff] (!%p345_p9)   ;;  %v1615_v15 = vld [vmem:[%s2138_s4 + $0x20] ss:$8 sps:$4 sm:$0xff] (!%p345_p9)   ;;  %v1620_v16 = vld [vmem:[%s2138_s4 + $0x34] ss:$8 sps:$4 sm:$0xff] (!%p345_p9)  }
  0x13   : > { %v1618_v17 = vld [vmem:[%s2138_s4 + $0x30] ss:$8 sps:$4 sm:$0xff] (!%p345_p9)   ;;  %v1623_v18 = vld [vmem:[%s2138_s4 + $0x44] ss:$8 sps:$4 sm:$0xff] (!%p345_p9)   ;;  %v1621_v19 = vld [vmem:[%s2138_s4 + $0x40] ss:$8 sps:$4 sm:$0xff] (!%p345_p9)  }
  0x14   : > { %1520 = vmatpush3.bf16.msra.mxu1 (!%p345_p9), %v1600_v1  ;;  %v1626_v20 = vld [vmem:[%s2138_s4 + $0x54] ss:$8 sps:$4 sm:$0xff] (!%p345_p9)   ;;  %v1624_v21 = vld [vmem:[%s2138_s4 + $0x50] ss:$8 sps:$4 sm:$0xff] (!%p345_p9)   ;;  %v1629_v22 = vld [vmem:[%s2138_s4 + $0x64] ss:$8 sps:$4 sm:$0xff] (!%p345_p9)  }
  0x15   : > { %1521 = vmatprep.subr.bf16.mxu1 (!%p345_p9), %v1601_v2  ;;  %v1627_v23 = vld [vmem:[%s2138_s4 + $0x60] ss:$8 sps:$4 sm:$0xff] (!%p345_p9)   ;;  %v1632_v24 = vld [vmem:[%s2138_s4 + $0x74] ss:$8 sps:$4 sm:$0xff] (!%p345_p9)   ;;  %v1630_v25 = vld [vmem:[%s2138_s4 + $0x70] ss:$8 sps:$4 sm:$0xff] (!%p345_p9)  }
  0x16   : > { %s2155_s12 = smov (!%p390_p10, %s1362_s12), 7  ;;  %v1633_v26 = vld [vmem:[%s2137_s3] sm:$0xff]   ;;  %v1643_v30 = vld [vmem:[%s2140_s6 + $0x48] sm:$0xff]   ;;  %v1645_v32 = vld [vmem:[%s2140_s6 + $0x50] sm:$0xff]  }
  0x17   : > { %s1363_s22 = sshll.u32 %s2155_s12, 2  ;;  %v1641_v28 = vld [vmem:[%s2140_s6 + $0x40] sm:$0xff]   ;;  %v1644_v31 = vld [vmem:[%s2140_s6 + $0x8] sm:$0xff]   ;;  %v1646_v33 = vld [vmem:[%s2140_s6 + $0x10] sm:$0xff]   ;;  %s1365_s24 = sshll.u32 %s2155_s12, 3 }
  0x18   : > { %s393_s29 = scalar_lea.vmem %s2134_s0, %s1363_s22  ;;  %1522 = vmatpush3.bf16.msra.mxu1 %v1601_v2  ;;  %v1642_v29 = vld [vmem:[%s2140_s6] sm:$0xff]   ;;  %1451 = vmatprep.subr.bf16.mxu0 %v1641_v28  ;;  %v1647_v34 = vld [vmem:[%s2140_s6 + $0x58] sm:$0xff]   ;;  %v1651_v38 = vld [vmem:[%s2140_s6 + $0x68] sm:$0xff]   ;;  %s399_s13 = scalar_lea.vmem %s2144_s10, %s1365_s24 }
  0x19   : > { %v1607_v4 = vld [vmem:[%s393_s29] sm:$0xff]   ;;  %1523 = vmatprep.subr.bf16.mxu1 %v1602_v3  ;;  %v1608_v10 = vld [vmem:[%s393_s29 + $0x8] sm:$0xff]   ;;  %1452 = vmatpush3.bf16.msra.mxu0 %v1642_v29  ;;  %v1648_v35 = vld [vmem:[%s2140_s6 + $0x18] sm:$0xff]   ;;  %s388_s22 = scalar_lea.vmem [#allocation2], %s1361_s16  ;;  %s1440_s24 = sshll.u32 %s1838_s21, 9 }
  0x1a   : > { %1533 = vmatprep.mubr.bf16.mxu1 %v1607_v4  ;;  %1453 = vmatprep.subr.bf16.mxu0 %v1643_v30  ;;  %v1649_v36 = vld [vmem:[%s2140_s6 + $0x60] sm:$0xff]   ;;  %v1652_v39 = vld [vmem:[%s2140_s6 + $0x28] sm:$0xff]   ;;  %v1635_v56 = vld [vmem:[%s2137_s3 + $0x10] sm:$0xff]   ;;  %s1270_s25 = sshll.u32 %s388_s22, 4  ;;  %s2087_s29 = scalar_lea.hbm %s2145_s11, %s1440_s24  ;;  %s2089_s25 = int_to_ptr.vmem [resolvable:$true] %s1270_s25 }
  0x1b   : > { %v1650_v37 = vld [vmem:[%s2140_s6 + $0x20] sm:$0xff]   ;;  %v1634_v55 = vld [vmem:[%s2137_s3 + $0x8] sm:$0xff]   ;;  %v1636_v57 = vld [vmem:[%s2137_s3 + $0x18] sm:$0xff]   ;;  %s2093_s21 = scalar_lea.sflag [#allocation3], %s386_s15  ;;  %s1754_s12 = smov [#allocation2]  }
  0x1c   : > { %1524 = vmatpush3.bf16.msra.mxu1 %v1602_v3  ;;  %v1366_v40 = vld [vmem:[%s2136_s2] ss:$0 sm:$0xff]  ;;  %v1638_v59 = vld [vmem:[%s2137_s3 + $0x28] sm:$0xff]   ;;  %v1639_v60 = vld [vmem:[%s2137_s3 + $0x30] sm:$0xff]   ;;  %v563_v3 = vlaneseq  ;;  %s1693_s14 = sshll.u32 %s1754_s12, 4  ;;  %s1694_s14 = int_to_ptr.vmem [resolvable:$false] %s1693_s14 }
  0x1d   : > { %1525 = vmatprep.subr.bf16.mxu1 %v1603_v5  ;;  %1454 = vmatpush3.bf16.msra.mxu0 %v1644_v31  ;;  %v1637_v58 = vld [vmem:[%s2137_s3 + $0x20] sm:$0xff]   ;;  %v1640_v61 = vld [vmem:[%s2137_s3 + $0x38] sm:$0xff]   ;;  %v1653_v62 = vld [vmem:[%s2140_s6 + $0x70] sm:$0xff]   ;;  %s1695_s16 = scalar_lea.vmem %s1694_s14, 1024  ;;  %p1696_p0 = scmp.lt.s32.totalorder %s2089_s25, %s1694_s14 }
  0x1e   : > { %1455 = vmatprep.subr.bf16.mxu0 %v1645_v32  ;;  %v1654_v63 = vld [vmem:[%s2140_s6 + $0x30] sm:$0xff]   ;;  %v1655_v0 = vld [vmem:[%s2140_s6 + $0x78] sm:$0xff]   ;;  %v1657_v2 = vld [vmem:[%s2142_s8 + $0x40] sm:$0xff]   ;;  %v564_v4 = vshrl.u32 %v563_v3, 7 }
  0x1f   : > { %v1656_v1 = vld [vmem:[%s2140_s6 + $0x38] sm:$0xff]   ;;  %v1659_v28 = vld [vmem:[%s2142_s8 + $0x48] sm:$0xff]  }
  0x20   : > { %1526 = vmatpush3.bf16.msra.mxu1 %v1603_v5  ;;  %v565_v5 = vsub.s32 0, %v564_v4 }
  0x21   : > { %1527 = vmatprep.subr.bf16.mxu1 %v1604_v6  ;;  %1456 = vmatpush3.bf16.msra.mxu0 %v1646_v33 }
  0x22   : > { %1457 = vmatprep.subr.bf16.mxu0 %v1647_v34  ;;  %v1660_v34 = vld [vmem:[%s2142_s8 + $0x8] sm:$0xff]  }
  0x24   : > { %1528 = vmatpush3.bf16.msra.mxu1 %v1604_v6  ;;  %v561_v6 = vld [vmem:[%s2139_s5] sm:$0x3] }
  0x25   : > { %1529 = vmatprep.subr.bf16.mxu1 %v1605_v7  ;;  %1458 = vmatpush3.bf16.msra.mxu0 %v1648_v35 }
  0x26   : > { %1459 = vmatprep.subr.bf16.mxu0 %v1649_v36 }
  0x28   : > { %1530 = vmatpush3.bf16.msra.mxu1 %v1605_v7  ;;  %v569_v7 = vsub.s32 1, %v564_v4 }
  0x29   : > { %1531 = vmatprep.subr.bf16.mxu1 %v1606_v8  ;;  %1460 = vmatpush3.bf16.msra.mxu0 %v1650_v37  ;;  %v1661_v37 = vld [vmem:[%s2142_s8 + $0x50] sm:$0xff]  }
  0x2a   : > { %1461 = vmatprep.subr.bf16.mxu0 %v1651_v38 }
  0x2c   : > { %1532 = vmatpush3.bf16.msra.mxu1 %v1606_v8  ;;  %v566_v8 = vrot.slane %v561_v6, %v565_v5 }
  0x2d   : > { %653 = vmatprep.subr.bf16.mxu1 %v1611_v9  ;;  %1462 = vmatpush3.bf16.msra.mxu0 %v1652_v39  ;;  %v570_v9 = vrot.slane %v561_v6, %v569_v7 }
  0x2e   : > { %1463 = vmatprep.subr.bf16.mxu0 %v1653_v62 }
  0x2f   : > { %1534 = vmatmul.mubr.bf16.vlgmr.msra.gmra.mrb[0].mxu1 %v1608_v10 }
  0x30   : > { %654 = vmatpush1.bf16.msra.mxu1 %v1609_v11  ;;  %685 = vmatprep.mubr.bf16.mxu1 %v1753_v27 }
  0x31   : > { %655 = vmatprep.subr.bf16.mxu1 %v1614_v12  ;;  %1464 = vmatpush3.bf16.msra.mxu0 %v1654_v63 }
  0x32   : > { %1465 = vmatprep.subr.bf16.mxu0 %v1655_v0 }
  0x34   : > { %656 = vmatpush1.bf16.msra.mxu1 %v1612_v13 }
  0x35   : > { %657 = vmatprep.subr.bf16.mxu1 %v1617_v14  ;;  %1466 = vmatpush3.bf16.msra.mxu0 %v1656_v1 }
  0x36   : > { %1489 = vmatprep.subr.bf16.mxu0 %v1657_v2 }
  0x38   : > { %658 = vmatpush1.bf16.msra.mxu1 %v1615_v15 }
  0x39   : > { %659 = vmatprep.subr.bf16.mxu1 %v1620_v16 }
  0x3c   : > { %660 = vmatpush1.bf16.msra.mxu1 %v1618_v17 }
  0x3d   : > { %661 = vmatprep.subr.bf16.mxu1 %v1623_v18 }
  0x40   : > { %662 = vmatpush1.bf16.msra.mxu1 %v1621_v19 }
  0x41   : > { %663 = vmatprep.subr.bf16.mxu1 %v1626_v20 }
  0x44   : > { %664 = vmatpush1.bf16.msra.mxu1 %v1624_v21 }
  0x45   : > { %665 = vmatprep.subr.bf16.mxu1 %v1629_v22 }
  0x48   : > { %666 = vmatpush1.bf16.msra.mxu1 %v1627_v23 }
  0x49   : > { %667 = vmatprep.subr.bf16.mxu1 %v1632_v24 }
  0x4c   : > { %668 = vmatpush1.bf16.msra.mxu1 %v1630_v25  ;;  %v1658_v25 = vld [vmem:[%s2142_s8] sm:$0xff]  }
  0x4d   : > { %1537 = vmatprep.subr.bf16.mxu1 %v1633_v26 }
 0x102   : > { %v1535_v41 = vpop.f32.mrb[0].mxu1 }
 0x103   : > { %v533_v42 = vadd.f32 %v1535_v41, %v1366_v40  ;;  %v524_v43 = vpop.f32.mrb[1].mxu1 }
 0x104   : > { %v525_v44 = vadd.f32 %v1366_v40, %v524_v43  ;;  %v1536_v45 = vpop.f32.mrb[2].mxu1  ;;  %v1663_v43 = vld [vmem:[%s2142_s8 + $0x58] sm:$0xff]  }
 0x105   : > { %v536_v46 = vadd.f32 %v1536_v45, %v1366_v40  ;;  %v527_v47 = vpop.f32.mrb[3].mxu1  ;;  %v541_v49 = vmax.f32 %v533_v42, 0.0  ;;  %v1662_v42 = vld [vmem:[%s2142_s8 + $0x10] sm:$0xff]   ;;  %v1665_v45 = vld [vmem:[%s2142_s8 + $0x60] sm:$0xff]  }
 0x106   : > { %v528_v48 = vadd.f32 %v1366_v40, %v527_v47  ;;  %v539_v51 = vmax.f32 %v525_v44, 0.0  ;;  %v1664_v44 = vld [vmem:[%s2142_s8 + $0x18] sm:$0xff]   ;;  %v1667_v47 = vld [vmem:[%s2142_s8 + $0x68] sm:$0xff]  }
 0x107   : > { %v542_v50 = vmax.f32 %v536_v46, 0.0  ;;  %v1666_v46 = vld [vmem:[%s2142_s8 + $0x20] sm:$0xff]  }
 0x108   : > { %v540_v52 = vmax.f32 %v528_v48, 0.0  ;;  %v1668_v48 = vld [vmem:[%s2142_s8 + $0x28] sm:$0xff]  }
 0x109   : > { %v544_v53 = vpack.c.bf16 %v542_v50, %v541_v49  ;;  %v1669_v49 = vld [vmem:[%s2142_s8 + $0x70] sm:$0xff]  }
 0x10a   : > { %v543_v54 = vpack.c.bf16 %v540_v52, %v539_v51  ;;  %v1670_v51 = vld [vmem:[%s2142_s8 + $0x30] sm:$0xff]  }
 0x10c   : > { %686 = vmatmul.mubr.bf16.vlgmr.msra.gmra.mrb[4].mxu1 %v543_v54 }
 0x10d   : > { %1538 = vmatpush3.bf16.msra.mxu1 %v1633_v26  ;;  %695 = vmatprep.mubr.bf16.mxu1 %v1753_v27 }
 0x10e   : > { %1539 = vmatprep.subr.bf16.mxu1 %v1634_v55 }
 0x111   : > { %1540 = vmatpush3.bf16.msra.mxu1 %v1634_v55 }
 0x112   : > { %1541 = vmatprep.subr.bf16.mxu1 %v1635_v56 }
 0x114   : > { %696 = vmatmul.mubr.bf16.gmra.mrb[8].mxu1 %v544_v53 }
 0x115   : > { %1542 = vmatpush3.bf16.msra.mxu1 %v1635_v56  ;;  %1553 = vmatprep.mubr.bf16.mxu1 %v543_v54  ;;  %v1672_v56 = vld [vmem:[%s2142_s8 + $0x38] sm:$0xff]  }
 0x116   : > { %1543 = vmatprep.subr.bf16.mxu1 %v1636_v57 }
 0x119   : > { %1544 = vmatpush3.bf16.msra.mxu1 %v1636_v57 }
 0x11a   : > { %1545 = vmatprep.subr.bf16.mxu1 %v1637_v58 }
 0x11d   : > { %1546 = vmatpush3.bf16.msra.mxu1 %v1637_v58 }
 0x11e   : > { %1547 = vmatprep.subr.bf16.mxu1 %v1638_v59 }
 0x121   : > { %1548 = vmatpush3.bf16.msra.mxu1 %v1638_v59 }
 0x122   : > { %1549 = vmatprep.subr.bf16.mxu1 %v1639_v60 }
 0x125   : > { %1550 = vmatpush3.bf16.msra.mxu1 %v1639_v60 }
 0x126   : > { %1551 = vmatprep.subr.bf16.mxu1 %v1640_v61 }
 0x129   : > { %1552 = vmatpush3.bf16.msra.mxu1 %v1640_v61  ;;  %v1417_v61 = vld [vmem:[%s2141_s7] ss:$0 sm:$0xff] }
 0x12c   : > { %1554 = vmatmul.mubr.bf16.vlgmr.msra.gmra.mrb[12].mxu1 %v544_v53  ;;  %v1671_v53 = vld [vmem:[%s2142_s8 + $0x78] sm:$0xff]  }
 0x1df   : > { %v687_v10 = vpop.f32.mrb[4].mxu1 }
 0x1e0   : > { %v688_v11 = vadd.f32 %v687_v10, %v566_v8  ;;  %v689_v12 = vpop.f32.mrb[5].mxu1 }
 0x1e1   : > { %v690_v13 = vadd.f32 %v689_v12, %v570_v9  ;;  %v691_v14 = vpop.f32.mrb[6].mxu1 }
 0x1e2   : > { %v692_v15 = vadd.f32 %v691_v14, %v566_v8  ;;  %v693_v16 = vpop.f32.mrb[7].mxu1  ;;  %v706_v18 = vmax.f32 %v688_v11, 0.0 }
 0x1e3   : > { %v694_v17 = vadd.f32 %v693_v16, %v570_v9  ;;  %v707_v20 = vmax.f32 %v690_v13, 0.0 }
 0x1e4   : > { %v708_v19 = vmax.f32 %v692_v15, 0.0  ;;  %v1418_v15 = vld [vmem:[%s2143_s9] ss:$0 sm:$0xff] }
 0x1e5   : > { %v709_v21 = vmax.f32 %v694_v17, 0.0 }
 0x1e6   : > { %v714_v22 = vpack.c.bf16 %v708_v19, %v706_v18 }
 0x1e7   : > { %v697_v23 = vpop.f32.mrb[8].mxu1  ;;  %v715_v24 = vpack.c.bf16 %v709_v21, %v707_v20 }
 0x1e8   : > { %v698_v26 = vadd.f32 %v697_v23, %v566_v8  ;;  %v699_v27 = vpop.f32.mrb[9].mxu1 }
 0x1e9   : > { %v700_v29 = vadd.f32 %v699_v27, %v570_v9  ;;  %v701_v30 = vpop.f32.mrb[10].mxu1  ;;  %894 = vmatprep.mubr.bf16.mxu0 %v715_v24 }
 0x1ea   : > { %v702_v31 = vadd.f32 %v701_v30, %v566_v8  ;;  %v703_v32 = vpop.f32.mrb[11].mxu1  ;;  %895 = vmatmul.mubr.bf16.vlgmr.msra.gmra.mrb[0].mxu0 %v714_v22  ;;  %v710_v35 = vmax.f32 %v698_v26, 0.0 }
 0x1eb   : > { %v704_v33 = vadd.f32 %v703_v32, %v570_v9  ;;  %1490 = vmatpush3.bf16.msra.mxu0 %v1658_v25  ;;  %v711_v38 = vmax.f32 %v700_v29, 0.0 }
 0x1ec   : > { %v712_v36 = vmax.f32 %v702_v31, 0.0  ;;  %1491 = vmatprep.subr.bf16.mxu0 %v1659_v28 }
 0x1ed   : > { %v713_v39 = vmax.f32 %v704_v33, 0.0 }
 0x1ee   : > { %v716_v40 = vpack.c.bf16 %v712_v36, %v710_v35 }
 0x1ef   : > { %v717_v41 = vpack.c.bf16 %v713_v39, %v711_v38  ;;  %1492 = vmatpush3.bf16.msra.mxu0 %v1660_v34 }
 0x1f0   : > { %1493 = vmatprep.subr.bf16.mxu0 %v1661_v37 }
 0x1f1   : > { %902 = vmatprep.mubr.bf16.mxu0 %v717_v41 }
 0x1f2   : > { %903 = vmatmul.mubr.bf16.gmra.mrb[4].mxu0 %v716_v40 }
 0x1f3   : > { %1494 = vmatpush3.bf16.msra.mxu0 %v1662_v42  ;;  %1190 = vmatprep.mubr.bf16.mxu0 %v715_v24 }
 0x1f4   : > { %1495 = vmatprep.subr.bf16.mxu0 %v1663_v43 }
 0x1f7   : > { %1496 = vmatpush3.bf16.msra.mxu0 %v1664_v44 }
 0x1f8   : > { %1497 = vmatprep.subr.bf16.mxu0 %v1665_v45 }
 0x1fb   : > { %1498 = vmatpush3.bf16.msra.mxu0 %v1666_v46 }
 0x1fc   : > { %1499 = vmatprep.subr.bf16.mxu0 %v1667_v47 }
 0x1ff   : > { %v1555_v50 = vpop.f32.mrb[12].mxu1  ;;  %1500 = vmatpush3.bf16.msra.mxu0 %v1668_v48 }
 0x200   : > { %v993_v52 = vpop.f32.mrb[13].mxu1  ;;  %1501 = vmatprep.subr.bf16.mxu0 %v1669_v49 }
 0x201   : > { %v1556_v54 = vpop.f32.mrb[14].mxu1 }
 0x202   : > { %v996_v55 = vpop.f32.mrb[15].mxu1 }
 0x203   : > { %1502 = vmatpush3.bf16.msra.mxu0 %v1670_v51 }
 0x204   : > { %1503 = vmatprep.subr.bf16.mxu0 %v1671_v53 }
 0x207   : > { %1504 = vmatpush3.bf16.msra.mxu0 %v1672_v56 }
 0x20a   : > { %1191 = vmatmul.mubr.bf16.vlgmr.msra.gmra.mrb[8].mxu0 %v714_v22 }
 0x20b   : > { %1198 = vmatprep.mubr.bf16.mxu0 %v717_v41 }
 0x212   : > { %1199 = vmatmul.mubr.bf16.gmra.mrb[12].mxu0 %v716_v40 }
 0x2bd   : > { %v1467_v57 = vpop.f32.mrb[0].mxu0 }
 0x2be   : > { %v1468_v58 = vpop.f32.mrb[1].mxu0 }
 0x2bf   : > { %v1469_v59 = vadd.f32 %v1468_v58, %v1467_v57  ;;  %v1470_v60 = vpop.f32.mrb[2].mxu0 }
 0x2c0   : > { %v1471_v62 = vpop.f32.mrb[3].mxu0 }
 0x2c1   : > { %v994_v63 = vadd.f32 %v1469_v59, %v993_v52  ;;  %v1472_v0 = vadd.f32 %v1471_v62, %v1470_v60 }
 0x2c3   : > { %v1015_v1 = vadd.f32 %v1417_v61, %v994_v63  ;;  %v997_v2 = vadd.f32 %v1472_v0, %v996_v55 }
 0x2c5   : > { %1019 = vst [vmem:[%s399_s13] sm:$0xff] %v1015_v1  ;;  %v1016_v3 = vadd.f32 %v1417_v61, %v997_v2  ;;  %v1473_v4 = vpop.f32.mrb[4].mxu0 }
 0x2c6   : > { %v1474_v5 = vpop.f32.mrb[5].mxu0 }
 0x2c7   : > { %1020 = vst [vmem:[%s399_s13 + $0x8] sm:$0xff] %v1016_v3  ;;  %v1475_v6 = vadd.f32 %v1474_v5, %v1473_v4  ;;  %v1476_v7 = vpop.f32.mrb[6].mxu0 }
 0x2c8   : > { %v1477_v8 = vpop.f32.mrb[7].mxu0 }
 0x2c9   : > { %v1002_v9 = vadd.f32 %v1555_v50, %v1475_v6  ;;  %v1478_v10 = vadd.f32 %v1477_v8, %v1476_v7 }
 0x2cb   : > { %v1017_v11 = vadd.f32 %v1417_v61, %v1002_v9  ;;  %v1005_v12 = vadd.f32 %v1556_v54, %v1478_v10 }
 0x2cd   : > { %1021 = vst [vmem:[%s399_s13 + $0x10] sm:$0xff] %v1017_v11  ;;  %v1018_v13 = vadd.f32 %v1417_v61, %v1005_v12 }
 0x2cf   : > { %1022 = vst [vmem:[%s399_s13 + $0x18] sm:$0xff] %v1018_v13  ;;  %s1689_s13 = scalar_lea.vmem %s2089_s25, 512 }
 0x2d0   : > { %p1690_p11 = scmp.ne.s32.totalorder %s2089_s25, %s1689_s13  ;;  %p1697_p1 = scmp.lt.s32.totalorder %s1695_s16, %s1689_s13 }
 0x2d2   : > { %p1691_p12 = pnand %p1690_p11, %p1855_p5  ;;  %p1698_p2 = por %p1697_p1, %p1696_p0 }
 0x2d4   : > { %p1692_p13 = pneg %p1691_p12 }
 0x2d6   : > { %p1699_p3 = pnand %p1698_p2, %p1692_p13 }
 0x2dd   : > { %v1505_v14 = vpop.f32.mrb[8].mxu0 }
 0x2de   : > { %v1506_v16 = vpop.f32.mrb[9].mxu0 }
 0x2df   : > { %v1507_v17 = vadd.f32 %v1506_v16, %v1505_v14  ;;  %v1508_v18 = vpop.f32.mrb[10].mxu0 }
 0x2e0   : > { %v1509_v19 = vpop.f32.mrb[11].mxu0 }
 0x2e1   : > { %v1193_v20 = vadd.f32 %v1507_v17, %v1418_v15  ;;  %v1510_v21 = vadd.f32 %v1509_v19, %v1508_v18 }
 0x2e3   : > { %v1211_v22 = vand.u32 2147483647, %v1193_v20  ;;  %v1196_v23 = vadd.f32 %v1510_v21, %v1418_v15  ;;  %v1207_v52 = vmax.f32 %v1193_v20, 0.0 }
 0x2e5   : > { %v1215_v24 = vsub.f32 0.0, %v1211_v22  ;;  %v1212_v25 = vand.u32 2147483647, %v1196_v23  ;;  %v1511_v26 = vpop.f32.mrb[12].mxu0  ;;  %v1208_v56 = vmax.f32 %v1196_v23, 0.0 }
 0x2e6   : > { %v1512_v27 = vpop.f32.mrb[13].mxu0 }
 0x2e7   : > { %v1219_v28 = vmul.f32 1.442695, %v1215_v24  ;;  %v1216_v29 = vsub.f32 0.0, %v1212_v25  ;;  %v1513_v30 = vadd.f32 %v1512_v27, %v1511_v26  ;;  %v1514_v31 = vpop.f32.mrb[14].mxu0 }
 0x2e8   : > { %v1515_v32 = vpop.f32.mrb[15].mxu0 }
 0x2e9   : > { %1673 = vpow2.f32 %v1219_v28  ;;  %v1221_v33 = vmul.f32 1.442695, %v1216_v29  ;;  %v1201_v34 = vadd.f32 %v1513_v30, %v1418_v15  ;;  %v1516_v35 = vadd.f32 %v1515_v32, %v1514_v31 }
 0x2eb   : > { %1675 = vpow2.f32 %v1221_v33  ;;  %v1213_v36 = vand.u32 2147483647, %v1201_v34  ;;  %v1204_v37 = vadd.f32 %v1516_v35, %v1418_v15  ;;  %v1209_v60 = vmax.f32 %v1201_v34, 0.0 }
 0x2ed   : > { %v1217_v38 = vsub.f32 0.0, %v1213_v36  ;;  %v1214_v39 = vand.u32 2147483647, %v1204_v37  ;;  %v1210_v0 = vmax.f32 %v1204_v37, 0.0 }
 0x2ef   : > { %v1223_v40 = vmul.f32 1.442695, %v1217_v38  ;;  %v1218_v41 = vsub.f32 0.0, %v1214_v39 }
 0x2f1   : > { %1677 = vpow2.f32 %v1223_v40  ;;  %v1225_v42 = vmul.f32 1.442695, %v1218_v41 }
 0x2f3   : > { %v1674_v43 = vpop.eup %1673  ;;  %1679 = vpow2.f32 %v1225_v42 }
 0x2f4   : > { %v1227_v44 = vadd.f32 1.0, %v1674_v43 }
 0x2f5   : > { %v1676_v45 = vpop.eup %1675 }
 0x2f6   : > { %1681 = vlog2.f32 %v1227_v44  ;;  %v1228_v46 = vadd.f32 1.0, %v1676_v45 }
 0x2f8   : > { %1683 = vlog2.f32 %v1228_v46 }
 0x2fb   : > { %v1678_v47 = vpop.eup %1677 }
 0x2fc   : > { %v1229_v48 = vadd.f32 1.0, %v1678_v47 }
 0x2fd   : > { %v1680_v49 = vpop.eup %1679 }
 0x2fe   : > { %1685 = vlog2.f32 %v1229_v48  ;;  %v1230_v50 = vadd.f32 1.0, %v1680_v49 }
 0x300   : > { %v1682_v51 = vpop.eup %1681  ;;  %1687 = vlog2.f32 %v1230_v50 }
 0x301   : > { %v1232_v53 = vmul.f32 0.6931472, %v1682_v51 }
 0x302   : > { %v1684_v54 = vpop.eup %1683 }
 0x303   : > { %v1239_v55 = vadd.f32 %v1232_v53, %v1207_v52  ;;  %v1234_v57 = vmul.f32 0.6931472, %v1684_v54 }
 0x305   : > { %1243 = vst [vmem:[%s388_s22] sm:$0xff] %v1239_v55  ;;  %v1240_v58 = vadd.f32 %v1234_v57, %v1208_v56 }
 0x307   : > { %1244 = vst [vmem:[%s388_s22 + $0x8] sm:$0xff] %v1240_v58 }
 0x308   : > { %v1686_v59 = vpop.eup %1685 }
 0x309   : > { %v1236_v61 = vmul.f32 0.6931472, %v1686_v59 }
 0x30a   : > { %v1688_v62 = vpop.eup %1687 }
 0x30b   : > { %v1241_v63 = vadd.f32 %v1236_v61, %v1209_v60  ;;  %v1238_v1 = vmul.f32 0.6931472, %v1688_v62 }
 0x30d   : > { %1245 = vst [vmem:[%s388_s22 + $0x10] sm:$0xff] %v1241_v63  ;;  %v1242_v2 = vadd.f32 %v1238_v1, %v1210_v0 }
 0x30f   : > { %1246 = vst [vmem:[%s388_s22 + $0x18] sm:$0xff] %v1242_v2 }
 0x310   : > { %1702 = shalt.err (!%p1699_p3)
}
 0x311   : > { %s1703_s15 = scalar_lea.hbm %s2087_s29, 512  ;;  %s1707_s30 = scalar_lea.hbm %s2145_s11, 1024 }
 0x312   : > { %p1704_p4 = scmp.ne.s32.totalorder %s2087_s29, %s1703_s15  ;;  %p1708_p9 = scmp.lt.u32.totalorder %s2087_s29, %s2145_s11 }
 0x313   : > { %p1709_p10 = scmp.lt.u32.totalorder %s1707_s30, %s1703_s15  ;;  %p1711_p12 = scmp.lt.u32.totalorder %s1703_s15, %s2087_s29 }
 0x314   : > { %p1705_p7 = pnand %p1704_p4, %p1855_p5 }
 0x315   : > { %p1710_p11 = por %p1709_p10, %p1708_p9 }
 0x316   : > { %p1706_p8 = pneg %p1705_p7 }
 0x317   : > { %p1712_p13 = por %p1711_p12, %p1710_p11 }
 0x319   : > { %p1713_p0 = pnand %p1712_p13, %p1706_p8 }
 0x31b   : > { %1716 = shalt.err (!%p1713_p0)
}
 0x31c   : > { %s1755_s13 = smov 128   ;;  %s1756_s14 = smov 8  }
 0x31d   : > { %1557 = dma.vmem_to_hbm [thread:$0]  (%p1855_p5), %s2089_s25, 512, %s2087_s29, %s2093_s21, %s1755_s13, %s1755_s13, %s1756_s14  }
 0x31e PF: > { %p1563_p1 = scmp.ge.s32.totalorder %s1751_s20, 2  ;;  %s1293_s16 = sand.u32 1, %s1739_s17  }
 0x31f   : > { %s1294_s15 = scalar_lea.sflag [#allocation3], %s1293_s16 }
 0x320   : > { %p1560_p2 = pnand %p1563_p1, %p1859_p6 }
 0x322   : > { %1734 = dma.done.wait (!%p1560_p2), %s1294_s15, 512  }
 0x323   : > { %1736 = vsyncadd (!%p1560_p2), %s1294_s15, 4294966784  ;;  %s2149_s22 = sld [smem:[#allocation5_spill]]  ;;  %p22_p3 = scmp.ge.s32.totalorder %s1842_s23, 4  }
 0x324   : > { %s2150_s17 = smov %s1743_s18  ;;  %s2151_s18 = smov %s1747_s19 }
 0x325   : > { %s2153_s20 = smov %s1842_s23  ;;  %24 = sbr.rel (!%p22_p3) target bundleno = 3 (0x3), region = 107 }
 0x329   : > { %s2152_s19 = smov %s2149_s22 }
 0x32c   :  { %1299 = vsyncpa [#allocation3], 1 }
 0x32d   :  { %1301 = vsyncpa [#allocation3 + $0x1], 1 }

// kernel: model_with_un_forward.4
= control target key start
LH: loop header
LB: loop body
LE: loop exit
PB: predicated region body
PF: predicated region fallthrough
CT: control target
= control target key end

     0   :  { %17 = vsyncpa [#allocation3], 0  ;;  %s2050_s0 = inlined_call_operand.vmem [shape: bf16[32,128], index: 0, kind: input, shape index: {}]   ;;  %s2051_s1 = inlined_call_operand.vmem [shape: bf16[128,128], index: 1, kind: input, shape index: {}]   ;;  %s2052_s2 = inlined_call_operand.vmem [shape: f32[1,128], index: 2, kind: input, shape index: {}]   ;;  %s2053_s3 = inlined_call_operand.vmem [shape: bf16[128,128], index: 3, kind: input, shape index: {}]   ;;  %s2054_s4 = inlined_call_operand.vmem [shape: bf16[128,256], index: 4, kind: input, shape index: {}]   ;;  %s2055_s5 = inlined_call_operand.vmem [shape: f32[1,256], index: 5, kind: input, shape index: {}]   ;;  %s2056_s6 = inlined_call_operand.vmem [shape: bf16[256,128], index: 6, kind: input, shape index: {}]   ;;  %s2057_s7 = inlined_call_operand.vmem [shape: f32[1,128], index: 7, kind: input, shape index: {}]   ;;  %s2058_s8 = inlined_call_operand.vmem [shape: bf16[256,128], index: 8, kind: input, shape index: {}]   ;;  %s2059_s9 = inlined_call_operand.vmem [shape: f32[1,128], index: 9, kind: input, shape index: {}]   ;;  %s2060_s10 = inlined_call_operand.vmem [shape: f32[32,128], index: 10, kind: output, shape index: {0}]   ;;  %s2061_s11 = inlined_call_operand.hbm [shape: f32[32,128], index: 11, kind: output, shape index: {1}]  }
   0x1   :  { %19 = vsyncpa [#allocation3 + $0x1], 0  ;;  %s1714_s17 = smov 0   ;;  %s1716_s18 = smov 0  }
   0x2   :  { %s1718_s19 = smov 0   ;;  %s1720_s20 = smov 0  }
   0x3 LB: > { %2063 = sst [smem:[#allocation5_spill]] %s1642_s19  ;;  %s1735_s21 = sadd.s32 4294967295, %s1646_s20   ;;  %s1646_s20 = sphi %s1720_s20, %s2071_s20   ;;  %s1642_s19 = sphi %s1718_s19, %s2068_s19   ;;  %s1638_s18 = sphi %s1716_s18, %s2070_s18   ;;  %s1634_s17 = sphi %s1714_s17, %s2069_s17  }
   0x4   : > { %s1274_s22 = sadd.s32 4294967294, %s1646_s20   ;;  %s1739_s23 = sadd.s32 1, %s1646_s20  }
   0x5   : > { %s273_s24 = sadd.s32 1, %s1642_s19  ;;  %s270_s25 = ssub.s32 %s1646_s20, %s1739_s23 }
   0x6   : > { %p283_p0 = scmp.ne.s32.totalorder %s1642_s19, %s1638_s18  ;;  %p271_p1 = scmp.eq.s32.totalorder %s270_s25, 0 }
   0x7   : > { %p284_p2 = scmp.eq.s32.totalorder %s1735_s21, 1  ;;  %p289_p3 = scmp.ne.s32.totalorder %s1638_s18, %s1634_s17 }
   0x8   : > { %p290_p4 = scmp.eq.s32.totalorder %s1274_s22, 1  ;;  %p1277_p7 = scmp.ge.s32.totalorder %s1646_s20, 1 }
   0x9   : > { %s1750_s26 = scalar_select %p271_p1, %s1642_s19, %s273_s24  }
   0xa   : > { %p1752_p5 = por %p284_p2, %p283_p0  ;;  %p1756_p6 = por %p290_p4, %p289_p3 }
   0xb   : > { %2064 = sst [smem:[#allocation6_spill]] %s1750_s26  ;;  %p344_p8 = scmp.lt.s32.totalorder %s1646_s20, 3 }
   0xd   : > { %p345_p9 = pnand %p1277_p7, %p344_p8 }
   0xe   : > { %v1503_v0 = vld [vmem:[%s2051_s1] sm:$0xff] (!%p345_p9)   ;;  %v1648_v1 = vmov (!%p345_p9), 0.0   ;;  %v1504_v2 = vld [vmem:[%s2051_s1 + $0x8] sm:$0xff] (!%p345_p9)   ;;  %vm1649_vm0 = vmmov (!%p345_p9), 0   ;;  %s1279_s14 = sshll.u32 (!%p345_p9), %s1735_s21, 1  ;;  %v1505_v3 = vld [vmem:[%s2051_s1 + $0x10] sm:$0xff] (!%p345_p9)   ;;  %v544_v62 = vlaneseq (!%p345_p9) }
   0xf   : > { %348 = sbr.rel (%p345_p9) target bundleno = 789 (0x315), region = 60  ;;  %1419 = vmatprep.subr.bf16.mxu0 (!%p345_p9), %v1648_v1  ;;  %1435 = vmatprep.mubr.msk.bf16.mxu0 (!%p345_p9), %vm1649_vm0, %v1648_v1  ;;  %p390_p10 = scmp.lt.s32.totalorder (!%p345_p9), %s1279_s14, 3  ;;  %v1512_v4 = vld [vmem:[%s2054_s4 + $0x4] ss:$8 sps:$4 sm:$0xff] (!%p345_p9)   ;;  %v1506_v5 = vld [vmem:[%s2051_s1 + $0x18] sm:$0xff] (!%p345_p9)   ;;  %v1509_v16 = vld [vmem:[%s2051_s1 + $0x30] sm:$0xff] (!%p345_p9)  }
  0x10   : > { %1420 = vmatpush3.bf16.msra.mxu0 (!%p345_p9), %v1503_v0  ;;  %634 = vmatprep.subr.bf16.mxu1 (!%p345_p9), %v1512_v4  ;;  %v1514_v6 = vld [vmem:[%s2054_s4] ss:$8 sps:$4 sm:$0xff] (!%p345_p9)   ;;  %v1515_v7 = vld [vmem:[%s2054_s4 + $0x14] ss:$8 sps:$4 sm:$0xff] (!%p345_p9)   ;;  %v1517_v8 = vld [vmem:[%s2054_s4 + $0x10] ss:$8 sps:$4 sm:$0xff] (!%p345_p9)  }
  0x11   : > { %1421 = vmatprep.subr.bf16.mxu0 (!%p345_p9), %v1648_v1  ;;  %635 = vmatpush1.bf16.msra.mxu1 (!%p345_p9), %v1514_v6  ;;  %v1518_v9 = vld [vmem:[%s2054_s4 + $0x24] ss:$8 sps:$4 sm:$0xff] (!%p345_p9)   ;;  %v1520_v12 = vld [vmem:[%s2054_s4 + $0x20] ss:$8 sps:$4 sm:$0xff] (!%p345_p9)   ;;  %v1521_v13 = vld [vmem:[%s2054_s4 + $0x34] ss:$8 sps:$4 sm:$0xff] (!%p345_p9)  }
  0x12   : > { %636 = vmatprep.subr.bf16.mxu1 (!%p345_p9), %v1515_v7  ;;  %v1507_v10 = vld [vmem:[%s2051_s1 + $0x20] sm:$0xff] (!%p345_p9)   ;;  %v1508_v11 = vld [vmem:[%s2051_s1 + $0x28] sm:$0xff] (!%p345_p9)   ;;  %v1523_v14 = vld [vmem:[%s2054_s4 + $0x30] ss:$8 sps:$4 sm:$0xff] (!%p345_p9)   ;;  %v1650_v26 = vmov (!%p345_p9), 0   ;;  %v545_v63 = vshrl.u32 (!%p345_p9), %v544_v62, 7 }
  0x13   : > { %v1524_v15 = vld [vmem:[%s2054_s4 + $0x44] ss:$8 sps:$4 sm:$0xff] (!%p345_p9)   ;;  %v1526_v17 = vld [vmem:[%s2054_s4 + $0x40] ss:$8 sps:$4 sm:$0xff] (!%p345_p9)   ;;  %v1527_v18 = vld [vmem:[%s2054_s4 + $0x54] ss:$8 sps:$4 sm:$0xff] (!%p345_p9)   ;;  %666 = vmatprep.mubr.bf16.mxu1 (!%p345_p9), %v1650_v26 }
  0x14   : > { %1422 = vmatpush3.bf16.msra.mxu0 (!%p345_p9), %v1504_v2  ;;  %v1510_v19 = vld [vmem:[%s2051_s1 + $0x38] sm:$0xff] (!%p345_p9)   ;;  %v1530_v22 = vld [vmem:[%s2054_s4 + $0x64] ss:$8 sps:$4 sm:$0xff] (!%p345_p9)   ;;  %v1532_v23 = vld [vmem:[%s2054_s4 + $0x60] ss:$8 sps:$4 sm:$0xff] (!%p345_p9)   ;;  %v546_v0 = vsub.s32 (!%p345_p9), 0, %v545_v63 }
  0x15   : > { %1423 = vmatprep.subr.bf16.mxu0 (!%p345_p9), %v1648_v1  ;;  %637 = vmatpush1.bf16.msra.mxu1 (!%p345_p9), %v1517_v8  ;;  %v1529_v20 = vld [vmem:[%s2054_s4 + $0x50] ss:$8 sps:$4 sm:$0xff] (!%p345_p9)   ;;  %v1533_v24 = vld [vmem:[%s2054_s4 + $0x74] ss:$8 sps:$4 sm:$0xff] (!%p345_p9)   ;;  %v1544_v27 = vld [vmem:[%s2056_s6 + $0x40] sm:$0xff] (!%p345_p9)   ;;  %v550_v2 = vsub.s32 (!%p345_p9), 1, %v545_v63 }
  0x16   : > { %s2073_s14 = smov (!%p390_p10, %s1279_s14), 3  ;;  %638 = vmatprep.subr.bf16.mxu1 %v1518_v9  ;;  %v1535_v25 = vld [vmem:[%s2054_s4 + $0x70] ss:$8 sps:$4 sm:$0xff]   ;;  %v1545_v28 = vld [vmem:[%s2056_s6] sm:$0xff]   ;;  %v1546_v29 = vld [vmem:[%s2056_s6 + $0x48] sm:$0xff]   ;;  %s386_s15 = sand.u32 1, %s1638_s18  }
  0x17   : > { %s1280_s22 = sshll.u32 %s2073_s14, 2  ;;  %v1547_v30 = vld [vmem:[%s2056_s6 + $0x8] sm:$0xff]   ;;  %v1548_v31 = vld [vmem:[%s2056_s6 + $0x50] sm:$0xff]   ;;  %v1550_v33 = vld [vmem:[%s2056_s6 + $0x58] sm:$0xff]   ;;  %s1278_s19 = sshll.u32 %s386_s15, 4 }
  0x18   : > { %s1783_s29 = scalar_lea.vmem %s2050_s0, %s1280_s22  ;;  %1424 = vmatpush3.bf16.msra.mxu0 %v1505_v3  ;;  %v1549_v32 = vld [vmem:[%s2056_s6 + $0x10] sm:$0xff]   ;;  %v1551_v34 = vld [vmem:[%s2056_s6 + $0x18] sm:$0xff]   ;;  %v1552_v35 = vld [vmem:[%s2056_s6 + $0x60] sm:$0xff]   ;;  %s1282_s22 = sshll.u32 %s2073_s14, 3 }
  0x19   : > { %1425 = vmatprep.subr.bf16.mxu0 %v1648_v1  ;;  %639 = vmatpush1.bf16.msra.mxu1 %v1520_v12  ;;  %v1511_v21 = vld [vmem:[%s1783_s29] sm:$0xff]   ;;  %v1554_v37 = vld [vmem:[%s2056_s6 + $0x68] sm:$0xff]   ;;  %v1538_v51 = vld [vmem:[%s2053_s3 + $0x10] sm:$0xff]   ;;  %s399_s12 = scalar_lea.vmem %s2060_s10, %s1282_s22  ;;  %s1356_s16 = sshll.u32 %s1735_s21, 8 }
  0x1a   : > { %640 = vmatprep.subr.bf16.mxu1 %v1521_v13  ;;  %v1553_v36 = vld [vmem:[%s2056_s6 + $0x20] sm:$0xff]   ;;  %v1555_v38 = vld [vmem:[%s2056_s6 + $0x28] sm:$0xff]   ;;  %v1539_v52 = vld [vmem:[%s2053_s3 + $0x18] sm:$0xff]   ;;  %s388_s24 = scalar_lea.vmem [#allocation2], %s1278_s19  ;;  %s2005_s26 = scalar_lea.hbm %s2061_s11, %s1356_s16 }
  0x1b   : > { %v1283_v39 = vld [vmem:[%s2052_s2] ss:$0 sm:$0xff]  ;;  %v1537_v50 = vld [vmem:[%s2053_s3 + $0x8] sm:$0xff]   ;;  %v1542_v55 = vld [vmem:[%s2053_s3 + $0x30] sm:$0xff]   ;;  %s1187_s22 = sshll.u32 %s388_s24, 4  ;;  %s2009_s21 = scalar_lea.sflag [#allocation3], %s386_s15  ;;  %s2007_s22 = int_to_ptr.vmem [resolvable:$true] %s1187_s22 }
  0x1c   : > { %1426 = vmatpush3.bf16.msra.mxu0 %v1506_v5  ;;  %v1536_v48 = vld [vmem:[%s2053_s3] sm:$0xff]   ;;  %v1541_v54 = vld [vmem:[%s2053_s3 + $0x28] sm:$0xff]   ;;  %v1543_v56 = vld [vmem:[%s2053_s3 + $0x38] sm:$0xff]   ;;  %s1584_s30 = scalar_lea.vmem %s2007_s22, 256 }
  0x1d   : > { %1427 = vmatprep.subr.bf16.mxu0 %v1648_v1  ;;  %641 = vmatpush1.bf16.msra.mxu1 %v1523_v14  ;;  %v1540_v53 = vld [vmem:[%s2053_s3 + $0x20] sm:$0xff]   ;;  %v1556_v57 = vld [vmem:[%s2056_s6 + $0x70] sm:$0xff]   ;;  %v1558_v59 = vld [vmem:[%s2056_s6 + $0x78] sm:$0xff]   ;;  %p1585_p11 = scmp.ne.s32.totalorder %s2007_s22, %s1584_s30 }
  0x1e   : > { %642 = vmatprep.subr.bf16.mxu1 %v1524_v15  ;;  %v1557_v58 = vld [vmem:[%s2056_s6 + $0x30] sm:$0xff]   ;;  %v1559_v60 = vld [vmem:[%s2056_s6 + $0x38] sm:$0xff]   ;;  %v1560_v61 = vld [vmem:[%s2058_s8 + $0x40] sm:$0xff]  }
  0x1f   : > { %v1568_v26 = vld [vmem:[%s2058_s8 + $0x60] sm:$0xff]   ;;  %p1586_p12 = pnand %p1585_p11, %p1752_p5 }
  0x20   : > { %1428 = vmatpush3.bf16.msra.mxu0 %v1507_v10 }
  0x21   : > { %1429 = vmatprep.subr.bf16.mxu0 %v1648_v1  ;;  %643 = vmatpush1.bf16.msra.mxu1 %v1526_v17  ;;  %p1587_p13 = pneg %p1586_p12 }
  0x22   : > { %644 = vmatprep.subr.bf16.mxu1 %v1527_v18 }
  0x24   : > { %1430 = vmatpush3.bf16.msra.mxu0 %v1508_v11 }
  0x25   : > { %1431 = vmatprep.subr.bf16.mxu0 %v1648_v1  ;;  %645 = vmatpush1.bf16.msra.mxu1 %v1529_v20  ;;  %v1562_v20 = vld [vmem:[%s2058_s8 + $0x48] sm:$0xff]  }
  0x26   : > { %646 = vmatprep.subr.bf16.mxu1 %v1530_v22  ;;  %v1564_v22 = vld [vmem:[%s2058_s8 + $0x50] sm:$0xff]  }
  0x28   : > { %1432 = vmatpush3.bf16.msra.mxu0 %v1509_v16 }
  0x29   : > { %1433 = vmatprep.subr.bf16.mxu0 %v1648_v1  ;;  %647 = vmatpush1.bf16.msra.mxu1 %v1532_v23  ;;  %v1565_v23 = vld [vmem:[%s2058_s8 + $0x10] sm:$0xff]  }
  0x2a   : > { %648 = vmatprep.subr.bf16.mxu1 %v1533_v24  ;;  %v1566_v24 = vld [vmem:[%s2058_s8 + $0x58] sm:$0xff]  }
  0x2c   : > { %1434 = vmatpush3.bf16.msra.mxu0 %v1510_v19  ;;  %v1561_v19 = vld [vmem:[%s2058_s8] sm:$0xff]  }
  0x2d   : > { %649 = vmatpush1.bf16.msra.mxu1 %v1535_v25  ;;  %1366 = vmatprep.subr.bf16.mxu0 %v1544_v27  ;;  %v1567_v25 = vld [vmem:[%s2058_s8 + $0x18] sm:$0xff]   ;;  %v1569_v27 = vld [vmem:[%s2058_s8 + $0x20] sm:$0xff]  }
  0x2e   : > { %1439 = vmatprep.subr.bf16.mxu1 %v1648_v1 }
  0x2f   : > { %1436 = vmatmul.mubr.bf16.vlgmr.msra.gmra.mrb[0].mxu0 %v1511_v21  ;;  %v1563_v21 = vld [vmem:[%s2058_s8 + $0x8] sm:$0xff]  }
  0x30   : > { %1367 = vmatpush3.bf16.msra.mxu0 %v1545_v28  ;;  %v1570_v28 = vld [vmem:[%s2058_s8 + $0x68] sm:$0xff]  }
  0x31   : > { %1368 = vmatprep.subr.bf16.mxu0 %v1546_v29  ;;  %v1571_v29 = vld [vmem:[%s2058_s8 + $0x28] sm:$0xff]  }
  0x34   : > { %1369 = vmatpush3.bf16.msra.mxu0 %v1547_v30  ;;  %v1572_v30 = vld [vmem:[%s2058_s8 + $0x70] sm:$0xff]  }
  0x35   : > { %1370 = vmatprep.subr.bf16.mxu0 %v1548_v31 }
  0x38   : > { %1371 = vmatpush3.bf16.msra.mxu0 %v1549_v32  ;;  %v1573_v32 = vld [vmem:[%s2058_s8 + $0x30] sm:$0xff]  }
  0x39   : > { %1372 = vmatprep.subr.bf16.mxu0 %v1550_v33 }
  0x3c   : > { %1373 = vmatpush3.bf16.msra.mxu0 %v1551_v34  ;;  %v1574_v34 = vld [vmem:[%s2058_s8 + $0x78] sm:$0xff]  }
  0x3d   : > { %1374 = vmatprep.subr.bf16.mxu0 %v1552_v35 }
  0x40   : > { %1375 = vmatpush3.bf16.msra.mxu0 %v1553_v36 }
  0x41   : > { %1376 = vmatprep.subr.bf16.mxu0 %v1554_v37  ;;  %v1575_v37 = vld [vmem:[%s2058_s8 + $0x38] sm:$0xff]  }
  0x44   : > { %1377 = vmatpush3.bf16.msra.mxu0 %v1555_v38 }
  0x45   : > { %1378 = vmatprep.subr.bf16.mxu0 %v1556_v57 }
  0x48   : > { %1379 = vmatpush3.bf16.msra.mxu0 %v1557_v58 }
  0x49   : > { %1380 = vmatprep.subr.bf16.mxu0 %v1558_v59 }
  0x4c   : > { %1381 = vmatpush3.bf16.msra.mxu0 %v1559_v60 }
  0x4d   : > { %1397 = vmatprep.subr.bf16.mxu0 %v1560_v61 }
 0x102   : > { %v516_v40 = vpop.f32.mrb[0].mxu0 }
 0x103   : > { %v517_v41 = vadd.f32 %v1283_v39, %v516_v40  ;;  %v1437_v42 = vpop.f32.mrb[1].mxu0 }
 0x104   : > { %v519_v43 = vpop.f32.mrb[2].mxu0  ;;  %v1333_v42 = vld [vmem:[%s2057_s7] ss:$0 sm:$0xff] }
 0x105   : > { %v520_v44 = vadd.f32 %v1283_v39, %v519_v43  ;;  %v1438_v45 = vpop.f32.mrb[3].mxu0  ;;  %v523_v46 = vmax.f32 %v517_v41, 0.0 }
 0x107   : > { %v524_v47 = vmax.f32 %v520_v44, 0.0 }
 0x109   : > { %v525_v49 = vpack.c.bf16 %v524_v47, %v523_v46 }
 0x10b   : > { %667 = vmatmul.mubr.bf16.vlgmr.msra.gmra.mrb[0].mxu1 %v525_v49 }
 0x10c   : > { %1440 = vmatpush3.bf16.msra.mxu1 %v1536_v48  ;;  %1455 = vmatprep.mubr.msk.bf16.mxu1 %vm1649_vm0, %v1648_v1 }
 0x10d   : > { %1441 = vmatprep.subr.bf16.mxu1 %v1648_v1 }
 0x110   : > { %1442 = vmatpush3.bf16.msra.mxu1 %v1537_v50  ;;  %v1334_v50 = vld [vmem:[%s2059_s9] ss:$0 sm:$0xff] }
 0x111   : > { %1443 = vmatprep.subr.bf16.mxu1 %v1648_v1 }
 0x114   : > { %1444 = vmatpush3.bf16.msra.mxu1 %v1538_v51 }
 0x115   : > { %1445 = vmatprep.subr.bf16.mxu1 %v1648_v1 }
 0x118   : > { %1446 = vmatpush3.bf16.msra.mxu1 %v1539_v52 }
 0x119   : > { %1447 = vmatprep.subr.bf16.mxu1 %v1648_v1 }
 0x11c   : > { %1448 = vmatpush3.bf16.msra.mxu1 %v1540_v53 }
 0x11d   : > { %1449 = vmatprep.subr.bf16.mxu1 %v1648_v1 }
 0x120   : > { %1450 = vmatpush3.bf16.msra.mxu1 %v1541_v54 }
 0x121   : > { %1451 = vmatprep.subr.bf16.mxu1 %v1648_v1 }
 0x124   : > { %1452 = vmatpush3.bf16.msra.mxu1 %v1542_v55 }
 0x125   : > { %1453 = vmatprep.subr.bf16.mxu1 %v1648_v1  ;;  %v542_v1 = vld [vmem:[%s2055_s5] sm:$0x3] }
 0x126   : > { %v547_v3 = vrot.slane %v542_v1, %v546_v0  ;;  %v551_v4 = vrot.slane %v542_v1, %v550_v2 }
 0x128   : > { %1454 = vmatpush3.bf16.msra.mxu1 %v1543_v56 }
 0x12b   : > { %1456 = vmatmul.mubr.bf16.vlgmr.msra.gmra.mrb[4].mxu1 %v525_v49 }
 0x1de   : > { %v668_v5 = vpop.f32.mrb[0].mxu1 }
 0x1df   : > { %v669_v6 = vadd.f32 %v668_v5, %v547_v3  ;;  %v670_v7 = vpop.f32.mrb[1].mxu1 }
 0x1e0   : > { %v671_v8 = vadd.f32 %v670_v7, %v551_v4  ;;  %v672_v9 = vpop.f32.mrb[2].mxu1 }
 0x1e1   : > { %v673_v10 = vadd.f32 %v672_v9, %v547_v3  ;;  %v674_v11 = vpop.f32.mrb[3].mxu1  ;;  %v677_v13 = vmax.f32 %v669_v6, 0.0 }
 0x1e2   : > { %v675_v12 = vadd.f32 %v674_v11, %v551_v4  ;;  %v678_v15 = vmax.f32 %v671_v8, 0.0 }
 0x1e3   : > { %v679_v14 = vmax.f32 %v673_v10, 0.0 }
 0x1e4   : > { %v680_v16 = vmax.f32 %v675_v12, 0.0 }
 0x1e5   : > { %v681_v17 = vpack.c.bf16 %v679_v14, %v677_v13 }
 0x1e6   : > { %v682_v18 = vpack.c.bf16 %v680_v16, %v678_v15 }
 0x1e8   : > { %859 = vmatprep.mubr.bf16.mxu0 %v682_v18 }
 0x1e9   : > { %860 = vmatmul.mubr.bf16.vlgmr.msra.gmra.mrb[4].mxu0 %v681_v17 }
 0x1ea   : > { %1398 = vmatpush3.bf16.msra.mxu0 %v1561_v19  ;;  %1135 = vmatprep.mubr.bf16.mxu0 %v682_v18 }
 0x1eb   : > { %1399 = vmatprep.subr.bf16.mxu0 %v1562_v20 }
 0x1ee   : > { %1400 = vmatpush3.bf16.msra.mxu0 %v1563_v21 }
 0x1ef   : > { %1401 = vmatprep.subr.bf16.mxu0 %v1564_v22 }
 0x1f2   : > { %1402 = vmatpush3.bf16.msra.mxu0 %v1565_v23 }
 0x1f3   : > { %1403 = vmatprep.subr.bf16.mxu0 %v1566_v24 }
 0x1f6   : > { %1404 = vmatpush3.bf16.msra.mxu0 %v1567_v25 }
 0x1f7   : > { %1405 = vmatprep.subr.bf16.mxu0 %v1568_v26 }
 0x1fa   : > { %1406 = vmatpush3.bf16.msra.mxu0 %v1569_v27 }
 0x1fb   : > { %1407 = vmatprep.subr.bf16.mxu0 %v1570_v28 }
 0x1fe   : > { %v950_v31 = vpop.f32.mrb[4].mxu1  ;;  %1408 = vmatpush3.bf16.msra.mxu0 %v1571_v29 }
 0x1ff   : > { %v1457_v33 = vpop.f32.mrb[5].mxu1  ;;  %1409 = vmatprep.subr.bf16.mxu0 %v1572_v30 }
 0x200   : > { %v953_v35 = vpop.f32.mrb[6].mxu1 }
 0x201   : > { %v1458_v36 = vpop.f32.mrb[7].mxu1 }
 0x202   : > { %1410 = vmatpush3.bf16.msra.mxu0 %v1573_v32 }
 0x203   : > { %1411 = vmatprep.subr.bf16.mxu0 %v1574_v34 }
 0x206   : > { %1412 = vmatpush3.bf16.msra.mxu0 %v1575_v37 }
 0x209   : > { %1136 = vmatmul.mubr.bf16.vlgmr.msra.gmra.mrb[8].mxu0 %v681_v17 }
 0x2bc   : > { %v1382_v38 = vpop.f32.mrb[4].mxu0 }
 0x2bd   : > { %v1383_v39 = vpop.f32.mrb[5].mxu0 }
 0x2be   : > { %v1384_v40 = vadd.f32 %v1383_v39, %v1382_v38  ;;  %v1385_v41 = vpop.f32.mrb[6].mxu0 }
 0x2bf   : > { %v1386_v43 = vpop.f32.mrb[7].mxu0 }
 0x2c0   : > { %v951_v44 = vadd.f32 %v1384_v40, %v950_v31  ;;  %v1387_v45 = vadd.f32 %v1386_v43, %v1385_v41 }
 0x2c2   : > { %v964_v46 = vadd.f32 %v1333_v42, %v951_v44  ;;  %v954_v47 = vadd.f32 %v1387_v45, %v953_v35 }
 0x2c4   : > { %966 = vst [vmem:[%s399_s12] sm:$0xff] %v964_v46  ;;  %v965_v48 = vadd.f32 %v1333_v42, %v954_v47 }
 0x2c6   : > { %967 = vst [vmem:[%s399_s12 + $0x8] sm:$0xff] %v965_v48  ;;  %s1651_s12 = smov [#allocation2]  }
 0x2c7   : > { %s1588_s14 = sshll.u32 %s1651_s12, 4  ;;  %s1589_s14 = int_to_ptr.vmem [resolvable:$false] %s1588_s14 }
 0x2c8   : > { %s1590_s13 = scalar_lea.vmem %s1589_s14, 512  ;;  %p1591_p0 = scmp.lt.s32.totalorder %s2007_s22, %s1589_s14 }
 0x2c9   : > { %p1592_p1 = scmp.lt.s32.totalorder %s1590_s13, %s1584_s30 }
 0x2cb   : > { %p1593_p2 = por %p1592_p1, %p1591_p0 }
 0x2cd   : > { %p1594_p3 = pnand %p1593_p2, %p1587_p13 }
 0x2dc   : > { %v1413_v49 = vpop.f32.mrb[8].mxu0 }
 0x2dd   : > { %v1414_v51 = vpop.f32.mrb[9].mxu0 }
 0x2de   : > { %v1415_v52 = vadd.f32 %v1414_v51, %v1413_v49  ;;  %v1416_v53 = vpop.f32.mrb[10].mxu0 }
 0x2df   : > { %v1417_v54 = vpop.f32.mrb[11].mxu0 }
 0x2e0   : > { %v1138_v55 = vadd.f32 %v1415_v52, %v1334_v50  ;;  %v1418_v56 = vadd.f32 %v1417_v54, %v1416_v53 }
 0x2e2   : > { %v1146_v57 = vand.u32 2147483647, %v1138_v55  ;;  %v1141_v58 = vadd.f32 %v1418_v56, %v1334_v50  ;;  %v1144_v5 = vmax.f32 %v1138_v55, 0.0 }
 0x2e4   : > { %v1148_v59 = vsub.f32 0.0, %v1146_v57  ;;  %v1147_v60 = vand.u32 2147483647, %v1141_v58  ;;  %v1145_v9 = vmax.f32 %v1141_v58, 0.0 }
 0x2e6   : > { %v1150_v61 = vmul.f32 1.442695, %v1148_v59  ;;  %v1149_v62 = vsub.f32 0.0, %v1147_v60 }
 0x2e8   : > { %1576 = vpow2.f32 %v1150_v61  ;;  %v1152_v63 = vmul.f32 1.442695, %v1149_v62 }
 0x2ea   : > { %1578 = vpow2.f32 %v1152_v63 }
 0x2f2   : > { %v1577_v0 = vpop.eup %1576 }
 0x2f3   : > { %v1154_v1 = vadd.f32 1.0, %v1577_v0 }
 0x2f4   : > { %v1579_v2 = vpop.eup %1578 }
 0x2f5   : > { %1580 = vlog2.f32 %v1154_v1  ;;  %v1155_v3 = vadd.f32 1.0, %v1579_v2 }
 0x2f7   : > { %1582 = vlog2.f32 %v1155_v3 }
 0x2ff   : > { %v1581_v4 = vpop.eup %1580 }
 0x300   : > { %v1157_v6 = vmul.f32 0.6931472, %v1581_v4 }
 0x301   : > { %v1583_v7 = vpop.eup %1582 }
 0x302   : > { %v1160_v8 = vadd.f32 %v1157_v6, %v1144_v5  ;;  %v1159_v10 = vmul.f32 0.6931472, %v1583_v7 }
 0x304   : > { %1162 = vst [vmem:[%s388_s24] sm:$0xff] %v1160_v8  ;;  %v1161_v11 = vadd.f32 %v1159_v10, %v1145_v9 }
 0x306   : > { %1163 = vst [vmem:[%s388_s24 + $0x8] sm:$0xff] %v1161_v11 }
 0x307   : > { %1597 = shalt.err (!%p1594_p3)
}
 0x308   : > { %s1598_s15 = scalar_lea.hbm %s2005_s26, 256  ;;  %s1602_s24 = scalar_lea.hbm %s2061_s11, 512 }
 0x309   : > { %p1599_p4 = scmp.ne.s32.totalorder %s2005_s26, %s1598_s15  ;;  %p1603_p9 = scmp.lt.u32.totalorder %s2005_s26, %s2061_s11 }
 0x30a   : > { %p1604_p10 = scmp.lt.u32.totalorder %s1602_s24, %s1598_s15  ;;  %p1606_p12 = scmp.lt.u32.totalorder %s1598_s15, %s2005_s26 }
 0x30b   : > { %p1600_p7 = pnand %p1599_p4, %p1752_p5 }
 0x30c   : > { %p1605_p11 = por %p1604_p10, %p1603_p9 }
 0x30d   : > { %p1601_p8 = pneg %p1600_p7 }
 0x30e   : > { %p1607_p13 = por %p1606_p12, %p1605_p11 }
 0x310   : > { %p1608_p0 = pnand %p1607_p13, %p1601_p8 }
 0x312   : > { %1611 = shalt.err (!%p1608_p0)
}
 0x313   : > { %s1652_s30 = smov 128   ;;  %s1653_s12 = smov 8  }
 0x314   : > { %1459 = dma.vmem_to_hbm [thread:$0]  (%p1752_p5), %s2007_s22, 256, %s2005_s26, %s2009_s21, %s1652_s30, %s1652_s30, %s1653_s12  }
 0x315 PF: > { %p1465_p1 = scmp.ge.s32.totalorder %s1646_s20, 2  ;;  %s1210_s14 = sand.u32 1, %s1634_s17  }
 0x316   : > { %s1211_s13 = scalar_lea.sflag [#allocation3], %s1210_s14 }
 0x317   : > { %p1462_p2 = pnand %p1465_p1, %p1756_p6 }
 0x319   : > { %1629 = dma.done.wait (!%p1462_p2), %s1211_s13, 256  }
 0x31a   : > { %1631 = vsyncadd (!%p1462_p2), %s1211_s13, 4294967040  ;;  %s2067_s15 = sld [smem:[#allocation5_spill]]  ;;  %s2068_s19 = sld [smem:[#allocation6_spill]] }
 0x31b   : > { %p22_p3 = scmp.ge.s32.totalorder %s1739_s23, 4   ;;  %s2069_s17 = smov %s1638_s18 }
 0x31c   : > { %s2071_s20 = smov %s1739_s23 }
 0x31d   :  { %24 = sbr.rel (!%p22_p3) target bundleno = 3 (0x3), region = 107 }
 0x320   : > { %s2070_s18 = smov %s2067_s15 }
 0x324   :  { %1216 = vsyncpa [#allocation3], 1 }
 0x325   :  { %1218 = vsyncpa [#allocation3 + $0x1], 1 }

// kernel: model_with_un_forward.7
= control target key start
LH: loop header
LB: loop body
LE: loop exit
PB: predicated region body
PF: predicated region fallthrough
CT: control target
= control target key end

     0   :  { %s1222_s12 = smov 0   ;;  %s1376_s0 = inlined_call_operand.vmem [shape: bf16[32,4,4], index: 0, kind: input, shape index: {}]   ;;  %s1377_s1 = inlined_call_operand.vmem [shape: bf16[16,4], index: 1, kind: input, shape index: {}]   ;;  %s1378_s2 = inlined_call_operand.vmem [shape: bf16[4,16], index: 2, kind: input, shape index: {}]   ;;  %s1379_s3 = inlined_call_operand.vmem [shape: f32[32,16,16], index: 3, kind: output, shape index: {}]  }
   0x1 LB: > { %s1002_s13 = sadd.s32 4294967295, %s1198_s12   ;;  %p1006_p0 = scmp.ge.s32.totalorder %s1198_s12, 1  ;;  %s1198_s12 = sphi %s1222_s12, %s13_s12  }
   0x2   : > { %p138_p1 = scmp.lt.s32.totalorder %s1198_s12, 5 }
   0x4   : > { %p139_p2 = pnand %p1006_p0, %p138_p1 }
   0x5   : > { %s1007_s14 = sshll.u32 (!%p139_p2), %s1002_s13, 3  ;;  %v1200_v0 = vmov (!%p139_p2), 0.0   ;;  %vm1201_vm0 = vmmov (!%p139_p2), 0   ;;  %vm190_vm1 = vcmask (!%p139_p2), 1041408   ;;  %v1191_v4 = vld [vmem:[%s1377_s1] sm:$0xff] (!%p139_p2)   ;;  %vm186_vm2 = vcmask (!%p139_p2), 31744  }
   0x6   : > { %142 = sbr.rel (%p139_p2) target bundleno = 508 (0x1fc), region = 32  ;;  %1085 = vmatprep.subr.bf16.mxu0 (!%p139_p2), %v1200_v0  ;;  %p164_p3 = scmp.lt.s32.totalorder (!%p139_p2), %s1007_s14, 31  ;;  %1087 = vmatprep.mubr.msk.bf16.mxu0 (!%p139_p2), %vm1201_vm0, %v1200_v0  ;;  %v179_v18 = vld [vmem:[%s1378_s2] sm:$0x3] (!%p139_p2)  ;;  %vm283_vm3 = vcmask (!%p139_p2), 130048  }
   0x7   : > { %1091 = vmatprep.subr.bf16.mxu1 (!%p139_p2), %v1200_v0  ;;  %1093 = vmatprep.mubr.msk.bf16.mxu1 (!%p139_p2), %vm1201_vm0, %v1200_v0  ;;  %v1296_v19 = vsel (!%p139_p2), %vm190_vm1, %v179_v18, 0 }
   0x8   : > { %1092 = vmatpush3.bf16.msra.mxu1 (!%p139_p2), %v1296_v19 }
   0x9   : > { %1103 = vmatprep.subr.bf16.mxu1 (!%p139_p2), %v1200_v0 }
   0xd   : > { %s1381_s14 = smov (!%p164_p3, %s1007_s14), 31 }
   0xe   : > { %s1008_s15 = sshll.u32 %s1381_s14, 1  ;;  %s1052_s23 = sshll.u32 %s1381_s14, 4 }
   0xf   : > { %s1242_s18 = scalar_lea.vmem %s1376_s0, %s1008_s15  ;;  %s1339_s26 = scalar_lea.vmem %s1379_s3, %s1052_s23 }
  0x10   : > { %v180_v1 = vld [vmem:[%s1242_s18] sm:$0x3]  ;;  %v1015_v2 = vld [vmem:[%s1242_s18 + $0x2] sm:$0x3]  ;;  %v1020_v6 = vld [vmem:[%s1242_s18 + $0x4] sm:$0x3] }
  0x11   : > { %v192_v3 = vsel %vm190_vm1, %v180_v1, 0  ;;  %v289_v5 = vsel %vm190_vm1, %v1015_v2, 0  ;;  %v383_v7 = vsel %vm190_vm1, %v1020_v6, 0  ;;  %v1025_v8 = vld [vmem:[%s1242_s18 + $0x6] sm:$0x3] }
  0x12   : > { %1086 = vmatpush3.bf16.msra.mxu0 %v192_v3  ;;  %v477_v9 = vsel %vm190_vm1, %v1025_v8, 0  ;;  %v1030_v10 = vld [vmem:[%s1242_s18 + $0x8] sm:$0x3]  ;;  %v1035_v12 = vld [vmem:[%s1242_s18 + $0xa] sm:$0x3] }
  0x13   : > { %1097 = vmatprep.subr.bf16.mxu0 %v1200_v0  ;;  %v571_v11 = vsel %vm190_vm1, %v1030_v10, 0  ;;  %v665_v13 = vsel %vm190_vm1, %v1035_v12, 0  ;;  %v1040_v14 = vld [vmem:[%s1242_s18 + $0xc] sm:$0x3]  ;;  %v1045_v16 = vld [vmem:[%s1242_s18 + $0xe] sm:$0x3] }
  0x14   : > { %v759_v15 = vsel %vm190_vm1, %v1040_v14, 0  ;;  %v853_v17 = vsel %vm190_vm1, %v1045_v16, 0 }
  0x15   : > { %1088 = vmatmul.mubr.msk.bf16.vlgmr.msra.gmra.mrb[0].mxu0 %vm186_vm2, %v1191_v4 }
  0x16   : > { %1098 = vmatpush3.bf16.msra.mxu0 %v289_v5  ;;  %1099 = vmatprep.mubr.msk.bf16.mxu0 %vm1201_vm0, %v1200_v0 }
  0x17   : > { %1109 = vmatprep.subr.bf16.mxu0 %v1200_v0 }
  0x1d   : > { %1100 = vmatmul.mubr.msk.bf16.vlgmr.msra.gmra.mrb[4].mxu0 %vm186_vm2, %v1191_v4 }
  0x1e   : > { %1110 = vmatpush3.bf16.msra.mxu0 %v383_v7  ;;  %1111 = vmatprep.mubr.msk.bf16.mxu0 %vm1201_vm0, %v1200_v0 }
  0x1f   : > { %1121 = vmatprep.subr.bf16.mxu0 %v1200_v0 }
  0x25   : > { %1112 = vmatmul.mubr.msk.bf16.vlgmr.msra.gmra.mrb[8].mxu0 %vm186_vm2, %v1191_v4 }
  0x26   : > { %1122 = vmatpush3.bf16.msra.mxu0 %v477_v9  ;;  %1123 = vmatprep.mubr.msk.bf16.mxu0 %vm1201_vm0, %v1200_v0 }
  0x27   : > { %1133 = vmatprep.subr.bf16.mxu0 %v1200_v0 }
  0x2d   : > { %1124 = vmatmul.mubr.msk.bf16.vlgmr.msra.gmra.mrb[12].mxu0 %vm186_vm2, %v1191_v4 }
  0x2e   : > { %1134 = vmatpush3.bf16.msra.mxu0 %v571_v11  ;;  %1135 = vmatprep.mubr.msk.bf16.mxu0 %vm1201_vm0, %v1200_v0 }
  0x2f   : > { %1145 = vmatprep.subr.bf16.mxu0 %v1200_v0 }
  0x35   : > { %1136 = vmatmul.mubr.msk.bf16.vlgmr.msra.gmra.mrb[16].mxu0 %vm186_vm2, %v1191_v4 }
  0x36   : > { %1146 = vmatpush3.bf16.msra.mxu0 %v665_v13  ;;  %1147 = vmatprep.mubr.msk.bf16.mxu0 %vm1201_vm0, %v1200_v0 }
  0x37   : > { %1157 = vmatprep.subr.bf16.mxu0 %v1200_v0 }
  0x3d   : > { %1148 = vmatmul.mubr.msk.bf16.vlgmr.msra.gmra.mrb[20].mxu0 %vm186_vm2, %v1191_v4 }
  0x3e   : > { %1158 = vmatpush3.bf16.msra.mxu0 %v759_v15  ;;  %1159 = vmatprep.mubr.msk.bf16.mxu0 %vm1201_vm0, %v1200_v0 }
  0x3f   : > { %1169 = vmatprep.subr.bf16.mxu0 %v1200_v0 }
  0x45   : > { %1160 = vmatmul.mubr.msk.bf16.vlgmr.msra.gmra.mrb[24].mxu0 %vm186_vm2, %v1191_v4 }
  0x46   : > { %1170 = vmatpush3.bf16.msra.mxu0 %v853_v17  ;;  %1171 = vmatprep.mubr.msk.bf16.mxu0 %vm1201_vm0, %v1200_v0 }
  0x4d   : > { %1172 = vmatmul.mubr.msk.bf16.vlgmr.msra.gmra.mrb[28].mxu0 %vm186_vm2, %v1191_v4 }
  0xe8   : > { %v228_v20 = vpop.f32.mrb[0].mxu0 }
  0xe9   : > { %v1089_v21 = vpop.f32.mrb[1].mxu0 }
  0xea   : > { %v231_v22 = vpop.f32.mrb[2].mxu0 }
  0xeb   : > { %v235_v23 = vpack.c.bf16 %v231_v22, %v228_v20  ;;  %v1090_v24 = vpop.f32.mrb[3].mxu0 }
  0xed   : > { %1094 = vmatmul.mubr.msk.bf16.vlgmr.msra.gmra.mrb[0].mxu1 %vm186_vm2, %v235_v23 }
  0xee   : > { %1104 = vmatpush3.bf16.msra.mxu1 %v1296_v19  ;;  %1105 = vmatprep.mubr.msk.bf16.mxu1 %vm1201_vm0, %v1200_v0 }
  0xef   : > { %1115 = vmatprep.subr.bf16.mxu1 %v1200_v0 }
  0xf0   : > { %v325_v25 = vpop.f32.mrb[4].mxu0 }
  0xf1   : > { %v1101_v26 = vpop.f32.mrb[5].mxu0 }
  0xf2   : > { %v328_v27 = vpop.f32.mrb[6].mxu0 }
  0xf3   : > { %v332_v28 = vpack.c.bf16 %v328_v27, %v325_v25  ;;  %v1102_v29 = vpop.f32.mrb[7].mxu0 }
  0xf5   : > { %1106 = vmatmul.mubr.msk.bf16.vlgmr.msra.gmra.mrb[4].mxu1 %vm186_vm2, %v332_v28 }
  0xf6   : > { %1116 = vmatpush3.bf16.msra.mxu1 %v1296_v19  ;;  %1117 = vmatprep.mubr.msk.bf16.mxu1 %vm1201_vm0, %v1200_v0 }
  0xf7   : > { %1127 = vmatprep.subr.bf16.mxu1 %v1200_v0 }
  0xf8   : > { %v419_v30 = vpop.f32.mrb[8].mxu0 }
  0xf9   : > { %v1113_v31 = vpop.f32.mrb[9].mxu0 }
  0xfa   : > { %v422_v32 = vpop.f32.mrb[10].mxu0 }
  0xfb   : > { %v426_v33 = vpack.c.bf16 %v422_v32, %v419_v30  ;;  %v1114_v34 = vpop.f32.mrb[11].mxu0 }
  0xfd   : > { %1118 = vmatmul.mubr.msk.bf16.vlgmr.msra.gmra.mrb[8].mxu1 %vm186_vm2, %v426_v33 }
  0xfe   : > { %1128 = vmatpush3.bf16.msra.mxu1 %v1296_v19  ;;  %1129 = vmatprep.mubr.msk.bf16.mxu1 %vm1201_vm0, %v1200_v0 }
  0xff   : > { %1139 = vmatprep.subr.bf16.mxu1 %v1200_v0 }
 0x100   : > { %v513_v35 = vpop.f32.mrb[12].mxu0 }
 0x101   : > { %v1125_v36 = vpop.f32.mrb[13].mxu0 }
 0x102   : > { %v516_v37 = vpop.f32.mrb[14].mxu0 }
 0x103   : > { %v520_v38 = vpack.c.bf16 %v516_v37, %v513_v35  ;;  %v1126_v39 = vpop.f32.mrb[15].mxu0 }
 0x105   : > { %1130 = vmatmul.mubr.msk.bf16.vlgmr.msra.gmra.mrb[12].mxu1 %vm186_vm2, %v520_v38 }
 0x106   : > { %1140 = vmatpush3.bf16.msra.mxu1 %v1296_v19  ;;  %1141 = vmatprep.mubr.msk.bf16.mxu1 %vm1201_vm0, %v1200_v0 }
 0x107   : > { %1151 = vmatprep.subr.bf16.mxu1 %v1200_v0 }
 0x108   : > { %v607_v40 = vpop.f32.mrb[16].mxu0 }
 0x109   : > { %v1137_v41 = vpop.f32.mrb[17].mxu0 }
 0x10a   : > { %v610_v42 = vpop.f32.mrb[18].mxu0 }
 0x10b   : > { %v614_v43 = vpack.c.bf16 %v610_v42, %v607_v40  ;;  %v1138_v44 = vpop.f32.mrb[19].mxu0 }
 0x10d   : > { %1142 = vmatmul.mubr.msk.bf16.vlgmr.msra.gmra.mrb[16].mxu1 %vm186_vm2, %v614_v43 }
 0x10e   : > { %1152 = vmatpush3.bf16.msra.mxu1 %v1296_v19  ;;  %1153 = vmatprep.mubr.msk.bf16.mxu1 %vm1201_vm0, %v1200_v0 }
 0x10f   : > { %1163 = vmatprep.subr.bf16.mxu1 %v1200_v0 }
 0x110   : > { %v701_v45 = vpop.f32.mrb[20].mxu0 }
 0x111   : > { %v1149_v46 = vpop.f32.mrb[21].mxu0 }
 0x112   : > { %v704_v47 = vpop.f32.mrb[22].mxu0 }
 0x113   : > { %v708_v48 = vpack.c.bf16 %v704_v47, %v701_v45  ;;  %v1150_v49 = vpop.f32.mrb[23].mxu0 }
 0x115   : > { %1154 = vmatmul.mubr.msk.bf16.vlgmr.msra.gmra.mrb[20].mxu1 %vm186_vm2, %v708_v48 }
 0x116   : > { %1164 = vmatpush3.bf16.msra.mxu1 %v1296_v19  ;;  %1165 = vmatprep.mubr.msk.bf16.mxu1 %vm1201_vm0, %v1200_v0 }
 0x117   : > { %1175 = vmatprep.subr.bf16.mxu1 %v1200_v0 }
 0x118   : > { %v795_v50 = vpop.f32.mrb[24].mxu0 }
 0x119   : > { %v1161_v51 = vpop.f32.mrb[25].mxu0 }
 0x11a   : > { %v798_v52 = vpop.f32.mrb[26].mxu0 }
 0x11b   : > { %v802_v53 = vpack.c.bf16 %v798_v52, %v795_v50  ;;  %v1162_v54 = vpop.f32.mrb[27].mxu0 }
 0x11d   : > { %1166 = vmatmul.mubr.msk.bf16.vlgmr.msra.gmra.mrb[24].mxu1 %vm186_vm2, %v802_v53 }
 0x11e   : > { %1176 = vmatpush3.bf16.msra.mxu1 %v1296_v19  ;;  %1177 = vmatprep.mubr.msk.bf16.mxu1 %vm1201_vm0, %v1200_v0 }
 0x120   : > { %v889_v55 = vpop.f32.mrb[28].mxu0 }
 0x121   : > { %v1173_v56 = vpop.f32.mrb[29].mxu0 }
 0x122   : > { %v892_v57 = vpop.f32.mrb[30].mxu0 }
 0x123   : > { %v896_v58 = vpack.c.bf16 %v892_v57, %v889_v55  ;;  %v1174_v59 = vpop.f32.mrb[31].mxu0 }
 0x125   : > { %1178 = vmatmul.mubr.msk.bf16.vlgmr.msra.gmra.mrb[28].mxu1 %vm186_vm2, %v896_v58 }
 0x1c0   : > { %v276_v60 = vpop.f32.mrb[0].mxu1 }
 0x1c1   : > { %284 = vst.msk [vmem:[%s1339_s26] sm:$0xff] %vm283_vm3, %v276_v60  ;;  %v1095_v61 = vpop.f32.mrb[1].mxu1 }
 0x1c2   : > { %v279_v62 = vpop.f32.mrb[2].mxu1 }
 0x1c3   : > { %285 = vst.msk [vmem:[%s1339_s26 + $0x8] sm:$0xff] %vm283_vm3, %v279_v62  ;;  %v1096_v63 = vpop.f32.mrb[3].mxu1 }
 0x1c8   : > { %v370_v0 = vpop.f32.mrb[4].mxu1 }
 0x1c9   : > { %1018 = vst.msk [vmem:[%s1339_s26 + $0x10] sm:$0xff] %vm283_vm3, %v370_v0  ;;  %v1107_v1 = vpop.f32.mrb[5].mxu1 }
 0x1ca   : > { %v373_v2 = vpop.f32.mrb[6].mxu1 }
 0x1cb   : > { %1019 = vst.msk [vmem:[%s1339_s26 + $0x18] sm:$0xff] %vm283_vm3, %v373_v2  ;;  %v1108_v3 = vpop.f32.mrb[7].mxu1 }
 0x1d0   : > { %v464_v4 = vpop.f32.mrb[8].mxu1 }
 0x1d1   : > { %1023 = vst.msk [vmem:[%s1339_s26 + $0x20] sm:$0xff] %vm283_vm3, %v464_v4  ;;  %v1119_v5 = vpop.f32.mrb[9].mxu1 }
 0x1d2   : > { %v467_v6 = vpop.f32.mrb[10].mxu1 }
 0x1d3   : > { %1024 = vst.msk [vmem:[%s1339_s26 + $0x28] sm:$0xff] %vm283_vm3, %v467_v6  ;;  %v1120_v7 = vpop.f32.mrb[11].mxu1 }
 0x1d8   : > { %v558_v8 = vpop.f32.mrb[12].mxu1 }
 0x1d9   : > { %1028 = vst.msk [vmem:[%s1339_s26 + $0x30] sm:$0xff] %vm283_vm3, %v558_v8  ;;  %v1131_v9 = vpop.f32.mrb[13].mxu1 }
 0x1da   : > { %v561_v10 = vpop.f32.mrb[14].mxu1 }
 0x1db   : > { %1029 = vst.msk [vmem:[%s1339_s26 + $0x38] sm:$0xff] %vm283_vm3, %v561_v10  ;;  %v1132_v11 = vpop.f32.mrb[15].mxu1 }
 0x1e0   : > { %v652_v12 = vpop.f32.mrb[16].mxu1 }
 0x1e1   : > { %1033 = vst.msk [vmem:[%s1339_s26 + $0x40] sm:$0xff] %vm283_vm3, %v652_v12  ;;  %v1143_v13 = vpop.f32.mrb[17].mxu1 }
 0x1e2   : > { %v655_v14 = vpop.f32.mrb[18].mxu1 }
 0x1e3   : > { %1034 = vst.msk [vmem:[%s1339_s26 + $0x48] sm:$0xff] %vm283_vm3, %v655_v14  ;;  %v1144_v15 = vpop.f32.mrb[19].mxu1 }
 0x1e8   : > { %v746_v16 = vpop.f32.mrb[20].mxu1 }
 0x1e9   : > { %1038 = vst.msk [vmem:[%s1339_s26 + $0x50] sm:$0xff] %vm283_vm3, %v746_v16  ;;  %v1155_v17 = vpop.f32.mrb[21].mxu1 }
 0x1ea   : > { %v749_v18 = vpop.f32.mrb[22].mxu1 }
 0x1eb   : > { %1039 = vst.msk [vmem:[%s1339_s26 + $0x58] sm:$0xff] %vm283_vm3, %v749_v18  ;;  %v1156_v19 = vpop.f32.mrb[23].mxu1 }
 0x1f0   : > { %v840_v20 = vpop.f32.mrb[24].mxu1 }
 0x1f1   : > { %1043 = vst.msk [vmem:[%s1339_s26 + $0x60] sm:$0xff] %vm283_vm3, %v840_v20  ;;  %v1167_v21 = vpop.f32.mrb[25].mxu1 }
 0x1f2   : > { %v843_v22 = vpop.f32.mrb[26].mxu1 }
 0x1f3   : > { %1044 = vst.msk [vmem:[%s1339_s26 + $0x68] sm:$0xff] %vm283_vm3, %v843_v22  ;;  %v1168_v23 = vpop.f32.mrb[27].mxu1 }
 0x1f8   : > { %v934_v24 = vpop.f32.mrb[28].mxu1 }
 0x1f9   : > { %1048 = vst.msk [vmem:[%s1339_s26 + $0x70] sm:$0xff] %vm283_vm3, %v934_v24  ;;  %v1179_v25 = vpop.f32.mrb[29].mxu1 }
 0x1fa   : > { %v937_v26 = vpop.f32.mrb[30].mxu1 }
 0x1fb   : > { %1049 = vst.msk [vmem:[%s1339_s26 + $0x78] sm:$0xff] %vm283_vm3, %v937_v26  ;;  %v1180_v27 = vpop.f32.mrb[31].mxu1 }
 0x1fc PF: > { %s13_s12 = sadd.s32 1, %s1198_s12  }
 0x1fd   : > { %p10_p4 = scmp.ge.s32.totalorder %s13_s12, 6  }
 0x1ff   :  { %12 = sbr.rel (!%p10_p4) target bundleno = 1 (0x1), region = 76 }

// kernel: model_with_un_forward.5
= control target key start
LH: loop header
LB: loop body
LE: loop exit
PB: predicated region body
PF: predicated region fallthrough
CT: control target
= control target key end

     0   :  { %s1420_s0 = inlined_call_operand.vmem [shape: bf16[2,8,4,4], index: 0, kind: input, shape index: {}]   ;;  %s1421_s1 = inlined_call_operand.vmem [shape: bf16[16,4], index: 1, kind: input, shape index: {}]   ;;  %s1422_s2 = inlined_call_operand.vmem [shape: bf16[4,16], index: 2, kind: input, shape index: {}]   ;;  %s1423_s3 = inlined_call_operand.hbm [shape: f32[2,8,16,16], index: 3, kind: output, shape index: {0}]   ;;  %s1424_s4 = inlined_call_operand.hbm [shape: f32[2,16,16], index: 4, kind: output, shape index: {1}]   ;;  %s1425_s5 = inlined_call_operand.hbm [shape: s32[2,16,16], index: 5, kind: output, shape index: {2}]  }
   0x1   :  { %1428 = sst [smem:[#allocation9_spill]] %s1420_s0 }
   0x2   :  { %11 = vsyncpa [#allocation3], 0 }
   0x3   :  { %13 = vsyncpa [#allocation3 + $0x1], 0 }
   0x4   :  { %14 = vsyncpa [#allocation5], 0 }
   0x5   :  { %16 = vsyncpa [#allocation5 + $0x1], 0  ;;  %s1167_s18 = smov 0   ;;  %s1169_s19 = smov 0  }
   0x6   :  { %s1171_s20 = smov 0   ;;  %s1173_s21 = smov 0  }
   0x7   :  { %s1175_s22 = smov 0   ;;  %s1177_s23 = smov 0  }
   0x8 LB: > { %s1427_s24 = sadd.s32 4294967295, %s1088_s23   ;;  %s1426_s25 = sadd.s32 4294967294, %s1088_s23   ;;  %s1088_s23 = sphi %s1177_s23, %s22_s23   ;;  %s1084_s22 = sphi %s1175_s22, %s1438_s22   ;;  %s1080_s21 = sphi %s1173_s21, %s1437_s21   ;;  %s1076_s20 = sphi %s1171_s20, %s1436_s20   ;;  %s1072_s19 = sphi %s1169_s19, %s1435_s19   ;;  %s1068_s18 = sphi %s1167_s18, %s1434_s18  }
   0x9   : > { %s34_s26 = sadd.s32 1, %s1084_s22  ;;  %s116_s27 = sadd.s32 1, %s1076_s20 }
   0xa   : > { %p36_p0 = scmp.ge.s32.totalorder %s34_s26, 2  ;;  %p126_p1 = scmp.ne.s32.totalorder %s1076_s20, %s1072_s19 }
   0xb   : > { %p127_p2 = scmp.eq.s32.totalorder %s1427_s24, 1  ;;  %p132_p3 = scmp.ne.s32.totalorder %s1072_s19, %s1068_s18 }
   0xc   : > { %s1440_s26 = smov (%p36_p0, %s34_s26), 0  ;;  %p133_p5 = scmp.eq.s32.totalorder %s1426_s25, 1 }
   0xd   : > { %p1209_p4 = por %p127_p2, %p126_p1  ;;  %s111_s29 = ssub.s32 %s1084_s22, %s1440_s26 }
   0xe   : > { %p710_p6 = scmp.ge.s32.totalorder %s1088_s23, 1  ;;  %p114_p7 = scmp.eq.s32.totalorder %s111_s29, 0 }
   0xf   : > { %p1218_p8 = por %p133_p5, %p132_p3  ;;  %p227_p9 = scmp.lt.s32.totalorder %s1088_s23, 3 }
  0x10   : > { %s1224_s6 = scalar_select %p114_p7, %s1076_s20, %s116_s27  }
  0x11   : > { %p228_p10 = pnand %p710_p6, %p227_p9 }
  0x12   : > { %s1227_s7 = sand.u32 (!%p228_p10), 1, %s1072_s19   ;;  %p270_p11 = scmp.lt.s32.totalorder (!%p228_p10), %s1080_s21, 1  ;;  %v285_v0 = vld [vmem:[%s1421_s1] sm:$0xf] (!%p228_p10)  ;;  %v286_v1 = vld [vmem:[%s1421_s1 + $0x4] sm:$0xf] (!%p228_p10) }
  0x13   : > { %231 = sbr.rel (%p228_p10) target bundleno = 558 (0x22e), region = 32  ;;  %s711_s12 = sshll.u32 (!%p228_p10), %s1227_s7, 7  ;;  %v287_v2 = vld [vmem:[%s1422_s2] sm:$0x3] (!%p228_p10)  ;;  %v1090_v3 = vmov (!%p228_p10), -inf   ;;  %v1094_v4 = vmov (!%p228_p10), -inf  }
  0x14   : > { %s712_s13 = sshll.u32 (!%p228_p10), %s1227_s7, 4  ;;  %s1431_s0 = sld [smem:[#allocation9_spill]] (!%p228_p10) }
  0x15   : > { %s1247_s24 = scalar_lea.vmem (!%p228_p10), [#allocation2], %s711_s12  ;;  %s1249_s8 = scalar_lea.vmem (!%p228_p10), [#allocation4], %s712_s13 }
  0x16   : > { %s1251_s9 = scalar_lea.vmem (!%p228_p10), [#allocation6], %s712_s13  ;;  %s1253_s10 = smov (!%p228_p10), 0  }
  0x1a   : > { %s271_s16 = scalar_select %p270_p11, %s1080_s21, 1 }
  0x1c   : > { %s733_s17 = sshll.u32 %s271_s16, 4 }
  0x1d   : > { %s1245_s25 = scalar_lea.vmem %s1431_s0, %s733_s17 }
  0x1e LB: >> { %v1130_v5 = vmov 0.0   ;;  %vm1131_vm0 = vmmov 0   ;;  %s716_s11 = sshll.u32 %s1100_s10, 1  ;;  %vm308_vm1 = vcmask 1041408   ;;  %v717_v8 = vcombine.low %v285_v0, %v286_v1  ;;  %s720_s13 = sshll.u32 %s1100_s10, 4  ;;  %s1100_s10 = sphi %s1253_s10, %s293_s10   ;;  %v1096_v4 = vphi %v1094_v4, %v1095_v4   ;;  %v1092_v3 = vphi %v1090_v3, %v1091_v3  }
  0x1f   : >> { %741 = vmatprep.subr.bf16.mxu0 %v1130_v5  ;;  %743 = vmatprep.mubr.msk.bf16.mxu0 %vm1131_vm0, %v1130_v5  ;;  %s297_s12 = scalar_lea.vmem %s1245_s25, %s716_s11  ;;  %vm304_vm2 = vcmask 31744   ;;  %v358_v9 = vsel %vm308_vm1, %v287_v2, 0  ;;  %s402_s14 = scalar_lea.vmem %s1247_s24, %s720_s13 [#allocation2]  ;;  %vm403_vm3 = vcmask 130048  }
  0x20   : >> { %747 = vmatprep.subr.bf16.mxu1 %v1130_v5  ;;  %749 = vmatprep.mubr.msk.bf16.mxu1 %vm1131_vm0, %v1130_v5  ;;  %v298_v6 = vld [vmem:[%s297_s12] sm:$0x3]  ;;  %s293_s10 = sadd.s32 1, %s1100_s10  }
  0x21   : >> { %v310_v7 = vsel %vm308_vm1, %v298_v6, 0  ;;  %748 = vmatpush3.bf16.msra.mxu1 %v358_v9  ;;  %p290_p12 = scmp.ge.s32.totalorder %s293_s10, 8  }
  0x22   : >> { %742 = vmatpush3.bf16.msra.mxu0 %v310_v7  ;;  %v1102_v21 = vmov (%p290_p12), 0   ;;  %v1106_v22 = vmov (%p290_p12), 0   ;;  %v1110_v23 = vmov (%p290_p12), -inf   ;;  %v1114_v24 = vmov (%p290_p12), -inf   ;;  %s1267_s15 = smov (%p290_p12), 0  }
  0x23   : > { %v1118_v25 = vmov (%p290_p12), 0.0   ;;  %v1122_v26 = vmov (%p290_p12), 0.0  }
  0x25   : >> { %744 = vmatmul.mubr.msk.bf16.vlgmr.msra.gmra.mrb[0].mxu0 %vm304_vm2, %v717_v8 }
  0xf8   : >> { %v346_v10 = vpop.f32.mrb[0].mxu0 }
  0xf9   : >> { %v745_v11 = vpop.f32.mrb[1].mxu0 }
  0xfa   : >> { %v349_v12 = vpop.f32.mrb[2].mxu0 }
  0xfb   : >> { %v353_v13 = vpack.c.bf16 %v349_v12, %v346_v10  ;;  %v746_v14 = vpop.f32.mrb[3].mxu0 }
  0xfd   : >> { %750 = vmatmul.mubr.msk.bf16.vlgmr.msra.gmra.mrb[0].mxu1 %vm304_vm2, %v353_v13 }
 0x1cf   : > { %292 = sbr.rel (!%p290_p12) target bundleno = 30 (0x1e), region = 119 }
 0x1d0   : >> { %v394_v15 = vpop.f32.mrb[0].mxu1 }
 0x1d1   : >> { %404 = vst.msk [vmem:[%s402_s14] sm:$0xff] %vm403_vm3, %v394_v15  ;;  %v406_v16 = vmax.f32 %v1096_v4, %v394_v15   ;;  %v751_v17 = vpop.f32.mrb[1].mxu1 }
 0x1d2   : >> { %v397_v18 = vpop.f32.mrb[2].mxu1 }
 0x1d3   : >> { %405 = vst.msk [vmem:[%s402_s14 + $0x8] sm:$0xff] %vm403_vm3, %v397_v18  ;;  %v407_v19 = vmax.f32 %v1092_v3, %v397_v18   ;;  %v752_v20 = vpop.f32.mrb[3].mxu1  ;;  %v1095_v4 = vmov %v406_v16  }
 0x1d5   : >> { %v1091_v3 = vmov %v407_v19  }
 0x1d6 LB: >> { %s721_s25 = sshll.u32 %s1128_s15, 4  ;;  %v436_v33 = vstv %s1128_s15  ;;  %s413_s15 = sadd.s32 1, %s1128_s15   ;;  %s1128_s15 = sphi %s1267_s15, %s413_s15   ;;  %v1124_v26 = vphi %v1122_v26, %v1123_v26   ;;  %v1120_v25 = vphi %v1118_v25, %v1119_v25   ;;  %v1116_v24 = vphi %v1114_v24, %v1115_v24   ;;  %v1112_v23 = vphi %v1110_v23, %v1111_v23   ;;  %v1108_v22 = vphi %v1106_v22, %v1107_v22   ;;  %v1104_v21 = vphi %v1102_v21, %v1103_v21  }
 0x1d7   : >> { %s421_s16 = scalar_lea.vmem %s1247_s24, %s721_s25 [#allocation2]  ;;  %p410_p13 = scmp.ge.s32.totalorder %s413_s15, 8  }
 0x1d8   : > { %s734_s17 = sshll.u32 (%p410_p13), %s1080_s21, 11  ;;  %s474_s27 = sshll.u32 (%p410_p13), %s1247_s24, 4  ;;  %s1289_s27 = int_to_ptr.vmem [resolvable:$true] %s474_s27 }
 0x1d9   : > { %s1287_s11 = scalar_lea.hbm (%p410_p13), %s1423_s3, %s734_s17  ;;  %s449_s12 = scalar_lea.sflag (%p410_p13), [#allocation3], %s1227_s7 }
 0x1da   : >> { %v422_v27 = vld [vmem:[%s421_s16] sm:$0xff]  ;;  %v423_v28 = vld [vmem:[%s421_s16 + $0x8] sm:$0xff]  ;;  %s910_s13 = scalar_lea.vmem (%p410_p13), %s1289_s27, 2048  ;;  %s1132_s14 = smov (%p410_p13), [#allocation2]  }
 0x1db   : >> { %v424_v29 = vsub.f32 %v422_v27, %v406_v16  ;;  %v425_v30 = vsub.f32 %v423_v28, %v407_v19  ;;  %p911_p0 = scmp.ne.s32.totalorder (%p410_p13), %s1289_s27, %s910_s13  ;;  %s914_s15 = sshll.u32 (%p410_p13), %s1132_s14, 4  ;;  %s915_s15 = int_to_ptr.vmem [resolvable:$false] %s914_s15 }
 0x1dc   : > { %s916_s24 = scalar_lea.vmem (%p410_p13), %s915_s15, 4096  ;;  %p917_p3 = scmp.lt.s32.totalorder (%p410_p13), %s1289_s27, %s915_s15 }
 0x1dd   : >> { %v426_v31 = vmul.f32 1.442695, %v424_v29  ;;  %v428_v32 = vmul.f32 1.442695, %v425_v30  ;;  %p912_p1 = pnand (%p410_p13), %p911_p0, %p1209_p4  ;;  %p918_p5 = scmp.lt.s32.totalorder (%p410_p13), %s916_s24, %s910_s13 }
 0x1df   : >> { %902 = vpow2.f32 %v426_v31  ;;  %p913_p2 = pneg (%p410_p13), %p912_p1  ;;  %p919_p6 = por (%p410_p13), %p918_p5, %p917_p3 }
 0x1e0   : >> { %904 = vpow2.f32 %v428_v32 }
 0x1e1   : > { %p920_p7 = pnand (%p410_p13), %p919_p6, %p913_p2 }
 0x1e7   : > { %412 = sbr.rel (!%p410_p13) target bundleno = 470 (0x1d6), region = 130 }
 0x1e9   : >> { %v903_v34 = vpop.eup %902 }
 0x1ea   : >> { %v905_v35 = vpop.eup %904  ;;  %vm430_vm4 = vcmp.gt.f32.partialorder %v903_v34, %v1116_v24  ;;  %v432_v36 = vadd.f32 %v1124_v26, %v903_v34  }
 0x1eb   : >> { %vm431_vm5 = vcmp.gt.f32.partialorder %v905_v35, %v1112_v23  ;;  %v433_v37 = vadd.f32 %v1120_v25, %v905_v35   ;;  %v434_v38 = vsel %vm430_vm4, %v903_v34, %v1116_v24   ;;  %v437_v39 = vsel %vm430_vm4, %v436_v33, %v1108_v22  }
 0x1ec   : >> { %v435_v40 = vsel %vm431_vm5, %v905_v35, %v1112_v23   ;;  %v438_v41 = vsel %vm431_vm5, %v436_v33, %v1104_v21   ;;  %v1107_v22 = vmov %v437_v39   ;;  %v1115_v24 = vmov %v434_v38   ;;  %446 = vst.msk [vmem:[%s1251_s9] sm:$0xff] (%p410_p13), %vm403_vm3, %v437_v39 }
 0x1ed   : >> { %v1103_v21 = vmov %v438_v41   ;;  %v1111_v23 = vmov %v435_v40   ;;  %v1119_v25 = vmov %v433_v37   ;;  %v1123_v26 = vmov %v432_v36   ;;  %447 = vst.msk [vmem:[%s1251_s9 + $0x8] sm:$0xff] (%p410_p13), %vm403_vm3, %v438_v41 }
 0x1ee   : > { %906 = vrcp.f32 %v432_v36 }
 0x1ef   : > { %908 = vrcp.f32 %v433_v37 }
 0x1f0   : > { %923 = shalt.err (!%p920_p7)
}
 0x1f1   : > { %s924_s25 = scalar_lea.hbm %s1287_s11, 2048  ;;  %s928_s29 = scalar_lea.hbm %s1423_s3, 4096 }
 0x1f2   : > { %p925_p9 = scmp.ne.s32.totalorder %s1287_s11, %s924_s25  ;;  %p929_p12 = scmp.lt.u32.totalorder %s1287_s11, %s1423_s3 }
 0x1f3   : > { %p930_p13 = scmp.lt.u32.totalorder %s928_s29, %s924_s25  ;;  %p932_p1 = scmp.lt.u32.totalorder %s924_s25, %s1287_s11 }
 0x1f4   : > { %p926_p10 = pnand %p925_p9, %p1209_p4 }
 0x1f5   : > { %p931_p0 = por %p930_p13, %p929_p12 }
 0x1f6   : > { %p927_p11 = pneg %p926_p10 }
 0x1f7   : > { %p933_p2 = por %p932_p1, %p931_p0 }
 0x1f9   : > { %p934_p3 = pnand %p933_p2, %p927_p11 }
 0x1fb   : > { %937 = shalt.err (!%p934_p3)
}
 0x1fc   : > { %s1133_s13 = smov 128   ;;  %s1134_s15 = smov 8   ;;  %v907_v42 = vpop.eup %906 }
 0x1fd   : > { %753 = dma.vmem_to_hbm [thread:$0]  (%p1209_p4), %s1289_s27, 2048, %s1287_s11, %s449_s12, %s1133_s13, %s1133_s13, %s1134_s15   ;;  %v909_v43 = vpop.eup %908  ;;  %v440_v44 = vmul.f32 %v907_v42, %v434_v38 }
 0x1fe   : > { %s1432_s24 = sadd.s32 4294967295, %s1088_s23   ;;  %s735_s16 = sshll.u32 %s1080_s21, 8  ;;  %v442_v45 = vmul.f32 %v909_v43, %v435_v40 }
 0x1ff   : > { %s1320_s25 = sand.u32 1, %s1432_s24   ;;  %s492_s17 = sshll.u32 %s1249_s8, 4  ;;  %444 = vst.msk [vmem:[%s1249_s8] sm:$0xff] %vm403_vm3, %v440_v44  ;;  %s1330_s17 = int_to_ptr.vmem [resolvable:$true] %s492_s17 }
 0x200   : > { %s510_s29 = sshll.u32 %s1251_s9, 4  ;;  %s1328_s0 = scalar_lea.hbm %s1424_s4, %s735_s16  ;;  %445 = vst.msk [vmem:[%s1249_s8 + $0x8] sm:$0xff] %vm403_vm3, %v442_v45  ;;  %s1339_s29 = int_to_ptr.vmem [resolvable:$true] %s510_s29 }
 0x201   : > { %s1337_s27 = scalar_lea.hbm %s1425_s5, %s735_s16  ;;  %s454_s9 = scalar_lea.sflag [#allocation5], %s1320_s25 }
 0x202   : > { %s938_s11 = scalar_lea.vmem %s1330_s17, 256  ;;  %s1135_s12 = smov [#allocation4]  }
 0x203   : > { %p939_p5 = scmp.ne.s32.totalorder %s1330_s17, %s938_s11  ;;  %s942_s24 = sshll.u32 %s1135_s12, 4  ;;  %s943_s24 = int_to_ptr.vmem [resolvable:$false] %s942_s24 }
 0x204   : > { %s944_s10 = scalar_lea.vmem %s943_s24, 512  ;;  %p945_p9 = scmp.lt.s32.totalorder %s1330_s17, %s943_s24 }
 0x205   : > { %p940_p6 = pnand %p939_p5, %p1209_p4  ;;  %p946_p10 = scmp.lt.s32.totalorder %s944_s10, %s938_s11 }
 0x207   : > { %p941_p7 = pneg %p940_p6  ;;  %p947_p11 = por %p946_p10, %p945_p9 }
 0x209   : > { %p948_p12 = pnand %p947_p11, %p941_p7 }
 0x20b   : > { %951 = shalt.err (!%p948_p12)
}
 0x20c   : > { %s952_s8 = scalar_lea.hbm %s1328_s0, 256  ;;  %s956_s21 = scalar_lea.hbm %s1424_s4, 512 }
 0x20d   : > { %p953_p13 = scmp.ne.s32.totalorder %s1328_s0, %s952_s8  ;;  %p957_p2 = scmp.lt.u32.totalorder %s1328_s0, %s1424_s4 }
 0x20e   : > { %p958_p3 = scmp.lt.u32.totalorder %s956_s21, %s952_s8  ;;  %p960_p6 = scmp.lt.u32.totalorder %s952_s8, %s1328_s0 }
 0x20f   : > { %p954_p0 = pnand %p953_p13, %p1209_p4 }
 0x210   : > { %p959_p5 = por %p958_p3, %p957_p2 }
 0x211   : > { %p955_p1 = pneg %p954_p0 }
 0x212   : > { %p961_p7 = por %p960_p6, %p959_p5 }
 0x214   : > { %p962_p9 = pnand %p961_p7, %p955_p1 }
 0x216   : > { %965 = shalt.err (!%p962_p9)
}
 0x217   : > { %754 = dma.vmem_to_hbm [thread:$0]  (%p1209_p4), %s1330_s17, 256, %s1328_s0, %s454_s9, %s1133_s13, %s1133_s13, %s1134_s15  }
 0x218   : > { %s966_s11 = scalar_lea.vmem %s1339_s29, 256  ;;  %s1136_s24 = smov [#allocation6]  }
 0x219   : > { %p967_p10 = scmp.ne.s32.totalorder %s1339_s29, %s966_s11  ;;  %s970_s10 = sshll.u32 %s1136_s24, 4  ;;  %s971_s10 = int_to_ptr.vmem [resolvable:$false] %s970_s10 }
 0x21a   : > { %s972_s8 = scalar_lea.vmem %s971_s10, 512  ;;  %p973_p13 = scmp.lt.s32.totalorder %s1339_s29, %s971_s10 }
 0x21b   : > { %p968_p11 = pnand %p967_p10, %p1209_p4  ;;  %p974_p0 = scmp.lt.s32.totalorder %s972_s8, %s966_s11 }
 0x21d   : > { %p969_p12 = pneg %p968_p11  ;;  %p975_p1 = por %p974_p0, %p973_p13 }
 0x21f   : > { %p976_p2 = pnand %p975_p1, %p969_p12 }
 0x221   : > { %979 = shalt.err (!%p976_p2)
}
 0x222   : > { %s980_s0 = scalar_lea.hbm %s1337_s27, 256  ;;  %s984_s14 = scalar_lea.hbm %s1425_s5, 512 }
 0x223   : > { %p981_p3 = scmp.ne.s32.totalorder %s1337_s27, %s980_s0  ;;  %p985_p7 = scmp.lt.u32.totalorder %s1337_s27, %s1425_s5 }
 0x224   : > { %p986_p9 = scmp.lt.u32.totalorder %s984_s14, %s980_s0  ;;  %p988_p11 = scmp.lt.u32.totalorder %s980_s0, %s1337_s27 }
 0x225   : > { %p982_p5 = pnand %p981_p3, %p1209_p4 }
 0x226   : > { %p987_p10 = por %p986_p9, %p985_p7 }
 0x227   : > { %p983_p6 = pneg %p982_p5 }
 0x228   : > { %p989_p12 = por %p988_p11, %p987_p10 }
 0x22a   : > { %p990_p13 = pnand %p989_p12, %p983_p6 }
 0x22c   : > { %993 = shalt.err (!%p990_p13)
}
 0x22d   : > { %755 = dma.vmem_to_hbm [thread:$0]  (%p1209_p4), %s1339_s29, 256, %s1337_s27, %s454_s9, %s1133_s13, %s1133_s13, %s1134_s15  }
 0x22e PF: > { %p769_p0 = scmp.ge.s32.totalorder %s1088_s23, 2  ;;  %s525_s12 = sand.u32 1, %s1068_s18  }
 0x22f   : > { %s526_s11 = scalar_lea.sflag [#allocation3], %s525_s12 }
 0x230   : > { %p760_p1 = pnand %p769_p0, %p1218_p8 }
 0x232   : > { %1059 = dma.done.wait (!%p760_p1), %s526_s11, 2048  }
 0x233   : > { %1061 = vsyncadd (!%p760_p1), %s526_s11, 4294965248  ;;  %s1433_s28 = sadd.s32 4294967294, %s1088_s23  }
 0x234   : > { %s534_s24 = sand.u32 1, %s1433_s28  }
 0x235   : > { %s535_s10 = scalar_lea.sflag [#allocation5], %s534_s24 }
 0x236   : > { %1063 = dma.done.wait (!%p760_p1), %s535_s10, 512  }
 0x237   : > { %1065 = vsyncadd (!%p760_p1), %s535_s10, 4294966784  ;;  %s22_s23 = sadd.s32 1, %s1088_s23   ;;  %s1434_s18 = smov %s1072_s19 }
 0x238   : > { %p19_p4 = scmp.ge.s32.totalorder %s22_s23, 4   ;;  %s1435_s19 = smov %s1076_s20 }
 0x239   : > { %s1436_s20 = smov %s1224_s6  ;;  %s1437_s21 = smov %s1084_s22 }
 0x23a   : > { %s1438_s22 = smov %s1440_s26  ;;  %21 = sbr.rel (!%p19_p4) target bundleno = 8 (0x8), region = 141 }
 0x241   :  { %549 = vsyncpa [#allocation3], 1 }
 0x242   :  { %551 = vsyncpa [#allocation3 + $0x1], 1 }
 0x243   :  { %552 = vsyncpa [#allocation5], 1 }
 0x244   :  { %554 = vsyncpa [#allocation5 + $0x1], 1 }

</bundles_post_ra>
